<compile_context>
chip_gen: v5e
topology: v5e:2x2
jax: 0.10.0
libtpu: 0.0.40
codegen_flags: <defaults>
</compile_context>

<pallas_src>
import jax
import jax.numpy as jnp
from jax import lax
from jax.experimental import pallas as pl
from jax.experimental.pallas import tpu as pltpu

# ------------------------- model dims (from the PyTorch module) ----------------
INPUT_DIM = 1
HIDDEN_DIM = 128
FC1_DIM = 64
NUM_CLASSES = 10
NUM_LAYERS = 1          # single-layer LSTM, as in the module defaults
BATCH_BLOCK = 8         # sequences per grid step (one f32 sublane tile)


def _sigmoid(x):
    # sigmoid(x) == 0.5*tanh(0.5*x) + 0.5 : one EUP op instead of exp + recip.
    return 0.5 * jnp.tanh(0.5 * x) + 0.5


def lstm_head_kernel(ih_ref, w_hh_ref, fc1_w_ref, fc1_b_ref,
                     fc2_w_ref, fc2_b_ref, out_ref):
    T = ih_ref.shape[0]                     # ih is (T, Bb, 4H): precomputed x@w_ih + b
    H = w_hh_ref.shape[0]

    w_hh = w_hh_ref[...]                    # (H, 4H) = weight_hh_l0.T (stays in VMEM)

    def step(t, carry):
        h, c = carry
        # Recurrent projection on the MXU; per-step input term read from VMEM.
        gates = ih_ref[t] + jnp.dot(h, w_hh,
                                    preferred_element_type=jnp.float32)   # (Bb, 4H)
        # PyTorch gate ordering: i, f, g, o  (slices are 128-lane aligned -> free)
        i_g = _sigmoid(gates[:, 0:H])
        f_g = _sigmoid(gates[:, H:2 * H])
        g_g = jnp.tanh(gates[:, 2 * H:3 * H])
        o_g = _sigmoid(gates[:, 3 * H:4 * H])
        c_new = f_g * c + i_g * g_g
        h_new = o_g * jnp.tanh(c_new)
        return (h_new, c_new)

    Bb = ih_ref.shape[1]
    h0 = jnp.zeros((Bb, H), jnp.float32)
    c0 = jnp.zeros((Bb, H), jnp.float32)
    # Short, fixed trip count: fully unroll for scheduler visibility.
    h_last, _ = lax.fori_loop(0, T, step, (h0, c0), unroll=True)   # lstm_out[:, -1, :]

    # fc1 -> tanh (weights already transposed to (H, 64) / (64, C))
    z = jnp.tanh(jnp.dot(h_last, fc1_w_ref[...],
                         preferred_element_type=jnp.float32) + fc1_b_ref[...])
    # Dropout(0.3): identity in eval mode.
    # TODO(synk): training-mode dropout mask not emitted (inference parity only).
    out = jnp.dot(z, fc2_w_ref[...],
                  preferred_element_type=jnp.float32) + fc2_b_ref[...]
    out_ref[...] = out.astype(out_ref.dtype)


def base_model_forward(x, params):
    """x: (B, T, INPUT_DIM) batch-first, same as the PyTorch module."""
    B, T, _ = x.shape
    H = HIDDEN_DIM

    # Pad batch up to a multiple of the per-grid-step block.
    Bp = ((B + BATCH_BLOCK - 1) // BATCH_BLOCK) * BATCH_BLOCK
    if Bp != B:
        x = jnp.pad(x, ((0, Bp - B), (0, 0), (0, 0)))

    # Input projection precomputed in the wrapper (K=1 contraction == broadcast
    # multiply); layout plumbing so the kernel sees (T, Bb, 4H) directly.
    x_tb = jnp.transpose(x[..., 0], (1, 0))                               # (T, Bp)
    ih = x_tb[:, :, None] * params["w_ih"][None, :, :] + params["b_lstm"][None, :, :]

    const2 = lambda s: (0, 0)   # weights: constant index_map -> VMEM-resident
    out = pl.pallas_call(
        lstm_head_kernel,
        out_shape=jax.ShapeDtypeStruct((Bp, NUM_CLASSES), jnp.float32),
        grid_spec=pltpu.PrefetchScalarGridSpec(
            num_scalar_prefetch=0,
            grid=(Bp // BATCH_BLOCK,),
            in_specs=[
                pl.BlockSpec((T, BATCH_BLOCK, 4 * H), lambda s: (0, s, 0)),   # ih
                pl.BlockSpec((H, 4 * H), const2),                             # w_hh
                pl.BlockSpec((H, FC1_DIM), const2),                           # fc1_w
                pl.BlockSpec((1, FC1_DIM), const2),                           # fc1_b
                pl.BlockSpec((FC1_DIM, NUM_CLASSES), const2),                 # fc2_w
                pl.BlockSpec((1, NUM_CLASSES), const2),                       # fc2_b
            ],
            out_specs=pl.BlockSpec((BATCH_BLOCK, NUM_CLASSES), lambda s: (s, 0)),
        ),
        compiler_params=pltpu.CompilerParams(
            dimension_semantics=("parallel",)),   # v7x: split sequences over 2 TCs
    )(ih,
      params["w_hh"],
      params["fc1_w"], params["fc1_b"],
      params["fc2_w"], params["fc2_b"])
    return out[:B]


def init_params(key):
    """Weights stored directly in the kernel-friendly (pre-transposed) layouts."""
    ks = jax.random.split(key, 8)
    H, C = HIDDEN_DIM, NUM_CLASSES
    s_lstm = 1.0 / jnp.sqrt(H)
    s_fc1 = 1.0 / jnp.sqrt(H)
    s_fc2 = 1.0 / jnp.sqrt(FC1_DIM)
    u = lambda k, shape, s: jax.random.uniform(k, shape, jnp.float32, -s, s)
    b_ih = u(ks[2], (1, 4 * H), s_lstm)
    b_hh = u(ks[3], (1, 4 * H), s_lstm)
    return {
        "w_ih":  u(ks[0], (1, 4 * H), s_lstm),      # weight_ih_l0.T  (Din=1 squeezed)
        "w_hh":  u(ks[1], (H, 4 * H), s_lstm),      # weight_hh_l0.T
        "b_lstm": b_ih + b_hh,                      # combined bias (PyTorch adds both)
        "fc1_w": u(ks[4], (H, FC1_DIM), s_fc1),     # fc1.weight.T
        "fc1_b": u(ks[5], (1, FC1_DIM), s_fc1),
        "fc2_w": u(ks[6], (FC1_DIM, C), s_fc2),     # fc2.weight.T
        "fc2_b": u(ks[7], (1, C), s_fc2),
    }


def reference_forward(x, p):
    """Pure-JAX reference matching PyTorch eval-mode semantics (same layouts)."""
    B, T, _ = x.shape
    H = HIDDEN_DIM
    h = jnp.zeros((B, H), jnp.float32)
    c = jnp.zeros((B, H), jnp.float32)
    for t in range(T):
        gates = (x[:, t, :] @ p["w_ih"].reshape(INPUT_DIM, 4 * H)
                 + h @ p["w_hh"] + p["b_lstm"])
        i_g = jax.nn.sigmoid(gates[:, :H])
        f_g = jax.nn.sigmoid(gates[:, H:2 * H])
        g_g = jnp.tanh(gates[:, 2 * H:3 * H])
        o_g = jax.nn.sigmoid(gates[:, 3 * H:])
        c = f_g * c + i_g * g_g
        h = o_g * jnp.tanh(c)
    z = jnp.tanh(h @ p["fc1_w"] + p["fc1_b"])
    return z @ p["fc2_w"] + p["fc2_b"]


if __name__ == "__main__":
    key = jax.random.PRNGKey(0)
    k_x, k_p = jax.random.split(key)

    B, T = 16, 8                               # 16 sequences -> grid=(2,)
    x = jax.random.normal(k_x, (B, T, INPUT_DIM), jnp.float32)
    params = init_params(k_p)

    out = base_model_forward(x, params)
    out = jax.block_until_ready(out)

    ref = reference_forward(x, params)
    assert out.shape == (B, NUM_CLASSES)
    assert jnp.allclose(out, ref, atol=1e-4, rtol=1e-4), "mismatch vs reference"

    print("KERNEL_OK")
</pallas_src>

<mosaic_0001>
module attributes {stable_mosaic.version = 11 : i64} {
  func.func @lstm_head_kernel(%arg0: i32, %arg1: memref<8x8x512xf32, #tpu.memory_space<vmem>>, %arg2: memref<128x512xf32, #tpu.memory_space<vmem>>, %arg3: memref<128x64xf32, #tpu.memory_space<vmem>>, %arg4: memref<1x64xf32, #tpu.memory_space<vmem>>, %arg5: memref<64x10xf32, #tpu.memory_space<vmem>>, %arg6: memref<1x10xf32, #tpu.memory_space<vmem>>, %arg7: memref<8x10xf32, #tpu.memory_space<vmem>>) attributes {dimension_semantics = [#tpu.dimension_semantics<parallel>], iteration_bounds = array<i64: 2>, scalar_prefetch = 0 : i64, scratch_operands = 0 : i64, tpu.core_type = #tpu.core_type<tc>, window_params = [{transform_indices = @transform_0, window_bounds = array<i64: 8, 8, 512>}, {pipeline_mode = #tpu.pipeline_mode<synchronous>, transform_indices = @transform_1, window_bounds = array<i64: 128, 512>}, {pipeline_mode = #tpu.pipeline_mode<synchronous>, transform_indices = @transform_2, window_bounds = array<i64: 128, 64>}, {pipeline_mode = #tpu.pipeline_mode<synchronous>, transform_indices = @transform_3, window_bounds = array<i64: 1, 64>}, {pipeline_mode = #tpu.pipeline_mode<synchronous>, transform_indices = @transform_4, window_bounds = array<i64: 64, 10>}, {pipeline_mode = #tpu.pipeline_mode<synchronous>, transform_indices = @transform_5, window_bounds = array<i64: 1, 10>}, {transform_indices = @transform_6, window_bounds = array<i64: 8, 10>}]} {
    %c0 = arith.constant 0 : index
    %c0_0 = arith.constant 0 : index
    %0 = vector.load %arg2[%c0, %c0_0] : memref<128x512xf32, #tpu.memory_space<vmem>>, vector<128x512xf32>
    %cst = arith.constant 0.000000e+00 : f32
    %1 = vector.broadcast %cst : f32 to vector<8x128xf32>
    %cst_1 = arith.constant 0.000000e+00 : f32
    %2 = vector.broadcast %cst_1 : f32 to vector<8x128xf32>
    %c0_i32 = arith.constant 0 : i32
    %3 = arith.index_cast %c0_i32 : i32 to index
    %c0_2 = arith.constant 0 : index
    %c0_3 = arith.constant 0 : index
    %4 = vector.load %arg1[%3, %c0_2, %c0_3] : memref<8x8x512xf32, #tpu.memory_space<vmem>>, vector<1x8x512xf32>
    %5 = vector.shape_cast %4 : vector<1x8x512xf32> to vector<8x512xf32>
    %cst_4 = arith.constant dense<0.000000e+00> : vector<8x512xf32>
    %6 = tpu.matmul %1, %0, %cst_4 {dimension_numbers = #tpu.dot_dimension_numbers<[1], [0], [0], [1], [0, 0, 1, 1], [], []>} : vector<8x128xf32>, vector<128x512xf32>, vector<8x512xf32> -> vector<8x512xf32>
    %7 = arith.addf %5, %6 : vector<8x512xf32>
    %8 = vector.extract_strided_slice %7 {offsets = [0, 0], sizes = [8, 128], strides = [1, 1]} : vector<8x512xf32> to vector<8x128xf32>
    %cst_5 = arith.constant 5.000000e-01 : f32
    %9 = vector.broadcast %cst_5 : f32 to vector<8x128xf32>
    %10 = arith.mulf %9, %8 : vector<8x128xf32>
    %11 = math.tanh %10 : vector<8x128xf32>
    %cst_6 = arith.constant 5.000000e-01 : f32
    %12 = vector.broadcast %cst_6 : f32 to vector<8x128xf32>
    %13 = arith.mulf %12, %11 : vector<8x128xf32>
    %cst_7 = arith.constant 5.000000e-01 : f32
    %14 = vector.broadcast %cst_7 : f32 to vector<8x128xf32>
    %15 = arith.addf %13, %14 : vector<8x128xf32>
    %16 = vector.extract_strided_slice %7 {offsets = [0, 128], sizes = [8, 128], strides = [1, 1]} : vector<8x512xf32> to vector<8x128xf32>
    %cst_8 = arith.constant 5.000000e-01 : f32
    %17 = vector.broadcast %cst_8 : f32 to vector<8x128xf32>
    %18 = arith.mulf %17, %16 : vector<8x128xf32>
    %19 = math.tanh %18 : vector<8x128xf32>
    %cst_9 = arith.constant 5.000000e-01 : f32
    %20 = vector.broadcast %cst_9 : f32 to vector<8x128xf32>
    %21 = arith.mulf %20, %19 : vector<8x128xf32>
    %cst_10 = arith.constant 5.000000e-01 : f32
    %22 = vector.broadcast %cst_10 : f32 to vector<8x128xf32>
    %23 = arith.addf %21, %22 : vector<8x128xf32>
    %24 = vector.extract_strided_slice %7 {offsets = [0, 256], sizes = [8, 128], strides = [1, 1]} : vector<8x512xf32> to vector<8x128xf32>
    %25 = math.tanh %24 : vector<8x128xf32>
    %26 = vector.extract_strided_slice %7 {offsets = [0, 384], sizes = [8, 128], strides = [1, 1]} : vector<8x512xf32> to vector<8x128xf32>
    %cst_11 = arith.constant 5.000000e-01 : f32
    %27 = vector.broadcast %cst_11 : f32 to vector<8x128xf32>
    %28 = arith.mulf %27, %26 : vector<8x128xf32>
    %29 = math.tanh %28 : vector<8x128xf32>
    %cst_12 = arith.constant 5.000000e-01 : f32
    %30 = vector.broadcast %cst_12 : f32 to vector<8x128xf32>
    %31 = arith.mulf %30, %29 : vector<8x128xf32>
    %cst_13 = arith.constant 5.000000e-01 : f32
    %32 = vector.broadcast %cst_13 : f32 to vector<8x128xf32>
    %33 = arith.addf %31, %32 : vector<8x128xf32>
    %34 = arith.mulf %23, %2 : vector<8x128xf32>
    %35 = arith.mulf %15, %25 : vector<8x128xf32>
    %36 = arith.addf %34, %35 : vector<8x128xf32>
    %37 = math.tanh %36 : vector<8x128xf32>
    %38 = arith.mulf %33, %37 : vector<8x128xf32>
    %c1_i32 = arith.constant 1 : i32
    %39 = arith.index_cast %c1_i32 : i32 to index
    %c0_14 = arith.constant 0 : index
    %c0_15 = arith.constant 0 : index
    %40 = vector.load %arg1[%39, %c0_14, %c0_15] : memref<8x8x512xf32, #tpu.memory_space<vmem>>, vector<1x8x512xf32>
    %41 = vector.shape_cast %40 : vector<1x8x512xf32> to vector<8x512xf32>
    %cst_16 = arith.constant dense<0.000000e+00> : vector<8x512xf32>
    %42 = tpu.matmul %38, %0, %cst_16 {dimension_numbers = #tpu.dot_dimension_numbers<[1], [0], [0], [1], [0, 0, 1, 1], [], []>} : vector<8x128xf32>, vector<128x512xf32>, vector<8x512xf32> -> vector<8x512xf32>
    %43 = arith.addf %41, %42 : vector<8x512xf32>
    %44 = vector.extract_strided_slice %43 {offsets = [0, 0], sizes = [8, 128], strides = [1, 1]} : vector<8x512xf32> to vector<8x128xf32>
    %cst_17 = arith.constant 5.000000e-01 : f32
    %45 = vector.broadcast %cst_17 : f32 to vector<8x128xf32>
    %46 = arith.mulf %45, %44 : vector<8x128xf32>
    %47 = math.tanh %46 : vector<8x128xf32>
    %cst_18 = arith.constant 5.000000e-01 : f32
    %48 = vector.broadcast %cst_18 : f32 to vector<8x128xf32>
    %49 = arith.mulf %48, %47 : vector<8x128xf32>
    %cst_19 = arith.constant 5.000000e-01 : f32
    %50 = vector.broadcast %cst_19 : f32 to vector<8x128xf32>
    %51 = arith.addf %49, %50 : vector<8x128xf32>
    %52 = vector.extract_strided_slice %43 {offsets = [0, 128], sizes = [8, 128], strides = [1, 1]} : vector<8x512xf32> to vector<8x128xf32>
    %cst_20 = arith.constant 5.000000e-01 : f32
    %53 = vector.broadcast %cst_20 : f32 to vector<8x128xf32>
    %54 = arith.mulf %53, %52 : vector<8x128xf32>
    %55 = math.tanh %54 : vector<8x128xf32>
    %cst_21 = arith.constant 5.000000e-01 : f32
    %56 = vector.broadcast %cst_21 : f32 to vector<8x128xf32>
    %57 = arith.mulf %56, %55 : vector<8x128xf32>
    %cst_22 = arith.constant 5.000000e-01 : f32
    %58 = vector.broadcast %cst_22 : f32 to vector<8x128xf32>
    %59 = arith.addf %57, %58 : vector<8x128xf32>
    %60 = vector.extract_strided_slice %43 {offsets = [0, 256], sizes = [8, 128], strides = [1, 1]} : vector<8x512xf32> to vector<8x128xf32>
    %61 = math.tanh %60 : vector<8x128xf32>
    %62 = vector.extract_strided_slice %43 {offsets = [0, 384], sizes = [8, 128], strides = [1, 1]} : vector<8x512xf32> to vector<8x128xf32>
    %cst_23 = arith.constant 5.000000e-01 : f32
    %63 = vector.broadcast %cst_23 : f32 to vector<8x128xf32>
    %64 = arith.mulf %63, %62 : vector<8x128xf32>
    %65 = math.tanh %64 : vector<8x128xf32>
    %cst_24 = arith.constant 5.000000e-01 : f32
    %66 = vector.broadcast %cst_24 : f32 to vector<8x128xf32>
    %67 = arith.mulf %66, %65 : vector<8x128xf32>
    %cst_25 = arith.constant 5.000000e-01 : f32
    %68 = vector.broadcast %cst_25 : f32 to vector<8x128xf32>
    %69 = arith.addf %67, %68 : vector<8x128xf32>
    %70 = arith.mulf %59, %36 : vector<8x128xf32>
    %71 = arith.mulf %51, %61 : vector<8x128xf32>
    %72 = arith.addf %70, %71 : vector<8x128xf32>
    %73 = math.tanh %72 : vector<8x128xf32>
    %74 = arith.mulf %69, %73 : vector<8x128xf32>
    %c2_i32 = arith.constant 2 : i32
    %75 = arith.index_cast %c2_i32 : i32 to index
    %c0_26 = arith.constant 0 : index
    %c0_27 = arith.constant 0 : index
    %76 = vector.load %arg1[%75, %c0_26, %c0_27] : memref<8x8x512xf32, #tpu.memory_space<vmem>>, vector<1x8x512xf32>
    %77 = vector.shape_cast %76 : vector<1x8x512xf32> to vector<8x512xf32>
    %cst_28 = arith.constant dense<0.000000e+00> : vector<8x512xf32>
    %78 = tpu.matmul %74, %0, %cst_28 {dimension_numbers = #tpu.dot_dimension_numbers<[1], [0], [0], [1], [0, 0, 1, 1], [], []>} : vector<8x128xf32>, vector<128x512xf32>, vector<8x512xf32> -> vector<8x512xf32>
    %79 = arith.addf %77, %78 : vector<8x512xf32>
    %80 = vector.extract_strided_slice %79 {offsets = [0, 0], sizes = [8, 128], strides = [1, 1]} : vector<8x512xf32> to vector<8x128xf32>
    %cst_29 = arith.constant 5.000000e-01 : f32
    %81 = vector.broadcast %cst_29 : f32 to vector<8x128xf32>
    %82 = arith.mulf %81, %80 : vector<8x128xf32>
    %83 = math.tanh %82 : vector<8x128xf32>
    %cst_30 = arith.constant 5.000000e-01 : f32
    %84 = vector.broadcast %cst_30 : f32 to vector<8x128xf32>
    %85 = arith.mulf %84, %83 : vector<8x128xf32>
    %cst_31 = arith.constant 5.000000e-01 : f32
    %86 = vector.broadcast %cst_31 : f32 to vector<8x128xf32>
    %87 = arith.addf %85, %86 : vector<8x128xf32>
    %88 = vector.extract_strided_slice %79 {offsets = [0, 128], sizes = [8, 128], strides = [1, 1]} : vector<8x512xf32> to vector<8x128xf32>
    %cst_32 = arith.constant 5.000000e-01 : f32
    %89 = vector.broadcast %cst_32 : f32 to vector<8x128xf32>
    %90 = arith.mulf %89, %88 : vector<8x128xf32>
    %91 = math.tanh %90 : vector<8x128xf32>
    %cst_33 = arith.constant 5.000000e-01 : f32
    %92 = vector.broadcast %cst_33 : f32 to vector<8x128xf32>
    %93 = arith.mulf %92, %91 : vector<8x128xf32>
    %cst_34 = arith.constant 5.000000e-01 : f32
    %94 = vector.broadcast %cst_34 : f32 to vector<8x128xf32>
    %95 = arith.addf %93, %94 : vector<8x128xf32>
    %96 = vector.extract_strided_slice %79 {offsets = [0, 256], sizes = [8, 128], strides = [1, 1]} : vector<8x512xf32> to vector<8x128xf32>
    %97 = math.tanh %96 : vector<8x128xf32>
    %98 = vector.extract_strided_slice %79 {offsets = [0, 384], sizes = [8, 128], strides = [1, 1]} : vector<8x512xf32> to vector<8x128xf32>
    %cst_35 = arith.constant 5.000000e-01 : f32
    %99 = vector.broadcast %cst_35 : f32 to vector<8x128xf32>
    %100 = arith.mulf %99, %98 : vector<8x128xf32>
    %101 = math.tanh %100 : vector<8x128xf32>
    %cst_36 = arith.constant 5.000000e-01 : f32
    %102 = vector.broadcast %cst_36 : f32 to vector<8x128xf32>
    %103 = arith.mulf %102, %101 : vector<8x128xf32>
    %cst_37 = arith.constant 5.000000e-01 : f32
    %104 = vector.broadcast %cst_37 : f32 to vector<8x128xf32>
    %105 = arith.addf %103, %104 : vector<8x128xf32>
    %106 = arith.mulf %95, %72 : vector<8x128xf32>
    %107 = arith.mulf %87, %97 : vector<8x128xf32>
    %108 = arith.addf %106, %107 : vector<8x128xf32>
    %109 = math.tanh %108 : vector<8x128xf32>
    %110 = arith.mulf %105, %109 : vector<8x128xf32>
    %c3_i32 = arith.constant 3 : i32
    %111 = arith.index_cast %c3_i32 : i32 to index
    %c0_38 = arith.constant 0 : index
    %c0_39 = arith.constant 0 : index
    %112 = vector.load %arg1[%111, %c0_38, %c0_39] : memref<8x8x512xf32, #tpu.memory_space<vmem>>, vector<1x8x512xf32>
    %113 = vector.shape_cast %112 : vector<1x8x512xf32> to vector<8x512xf32>
    %cst_40 = arith.constant dense<0.000000e+00> : vector<8x512xf32>
    %114 = tpu.matmul %110, %0, %cst_40 {dimension_numbers = #tpu.dot_dimension_numbers<[1], [0], [0], [1], [0, 0, 1, 1], [], []>} : vector<8x128xf32>, vector<128x512xf32>, vector<8x512xf32> -> vector<8x512xf32>
    %115 = arith.addf %113, %114 : vector<8x512xf32>
    %116 = vector.extract_strided_slice %115 {offsets = [0, 0], sizes = [8, 128], strides = [1, 1]} : vector<8x512xf32> to vector<8x128xf32>
    %cst_41 = arith.constant 5.000000e-01 : f32
    %117 = vector.broadcast %cst_41 : f32 to vector<8x128xf32>
    %118 = arith.mulf %117, %116 : vector<8x128xf32>
    %119 = math.tanh %118 : vector<8x128xf32>
    %cst_42 = arith.constant 5.000000e-01 : f32
    %120 = vector.broadcast %cst_42 : f32 to vector<8x128xf32>
    %121 = arith.mulf %120, %119 : vector<8x128xf32>
    %cst_43 = arith.constant 5.000000e-01 : f32
    %122 = vector.broadcast %cst_43 : f32 to vector<8x128xf32>
    %123 = arith.addf %121, %122 : vector<8x128xf32>
    %124 = vector.extract_strided_slice %115 {offsets = [0, 128], sizes = [8, 128], strides = [1, 1]} : vector<8x512xf32> to vector<8x128xf32>
    %cst_44 = arith.constant 5.000000e-01 : f32
    %125 = vector.broadcast %cst_44 : f32 to vector<8x128xf32>
    %126 = arith.mulf %125, %124 : vector<8x128xf32>
    %127 = math.tanh %126 : vector<8x128xf32>
    %cst_45 = arith.constant 5.000000e-01 : f32
    %128 = vector.broadcast %cst_45 : f32 to vector<8x128xf32>
    %129 = arith.mulf %128, %127 : vector<8x128xf32>
    %cst_46 = arith.constant 5.000000e-01 : f32
    %130 = vector.broadcast %cst_46 : f32 to vector<8x128xf32>
    %131 = arith.addf %129, %130 : vector<8x128xf32>
    %132 = vector.extract_strided_slice %115 {offsets = [0, 256], sizes = [8, 128], strides = [1, 1]} : vector<8x512xf32> to vector<8x128xf32>
    %133 = math.tanh %132 : vector<8x128xf32>
    %134 = vector.extract_strided_slice %115 {offsets = [0, 384], sizes = [8, 128], strides = [1, 1]} : vector<8x512xf32> to vector<8x128xf32>
    %cst_47 = arith.constant 5.000000e-01 : f32
    %135 = vector.broadcast %cst_47 : f32 to vector<8x128xf32>
    %136 = arith.mulf %135, %134 : vector<8x128xf32>
    %137 = math.tanh %136 : vector<8x128xf32>
    %cst_48 = arith.constant 5.000000e-01 : f32
    %138 = vector.broadcast %cst_48 : f32 to vector<8x128xf32>
    %139 = arith.mulf %138, %137 : vector<8x128xf32>
    %cst_49 = arith.constant 5.000000e-01 : f32
    %140 = vector.broadcast %cst_49 : f32 to vector<8x128xf32>
    %141 = arith.addf %139, %140 : vector<8x128xf32>
    %142 = arith.mulf %131, %108 : vector<8x128xf32>
    %143 = arith.mulf %123, %133 : vector<8x128xf32>
    %144 = arith.addf %142, %143 : vector<8x128xf32>
    %145 = math.tanh %144 : vector<8x128xf32>
    %146 = arith.mulf %141, %145 : vector<8x128xf32>
    %c4_i32 = arith.constant 4 : i32
    %147 = arith.index_cast %c4_i32 : i32 to index
    %c0_50 = arith.constant 0 : index
    %c0_51 = arith.constant 0 : index
    %148 = vector.load %arg1[%147, %c0_50, %c0_51] : memref<8x8x512xf32, #tpu.memory_space<vmem>>, vector<1x8x512xf32>
    %149 = vector.shape_cast %148 : vector<1x8x512xf32> to vector<8x512xf32>
    %cst_52 = arith.constant dense<0.000000e+00> : vector<8x512xf32>
    %150 = tpu.matmul %146, %0, %cst_52 {dimension_numbers = #tpu.dot_dimension_numbers<[1], [0], [0], [1], [0, 0, 1, 1], [], []>} : vector<8x128xf32>, vector<128x512xf32>, vector<8x512xf32> -> vector<8x512xf32>
    %151 = arith.addf %149, %150 : vector<8x512xf32>
    %152 = vector.extract_strided_slice %151 {offsets = [0, 0], sizes = [8, 128], strides = [1, 1]} : vector<8x512xf32> to vector<8x128xf32>
    %cst_53 = arith.constant 5.000000e-01 : f32
    %153 = vector.broadcast %cst_53 : f32 to vector<8x128xf32>
    %154 = arith.mulf %153, %152 : vector<8x128xf32>
    %155 = math.tanh %154 : vector<8x128xf32>
    %cst_54 = arith.constant 5.000000e-01 : f32
    %156 = vector.broadcast %cst_54 : f32 to vector<8x128xf32>
    %157 = arith.mulf %156, %155 : vector<8x128xf32>
    %cst_55 = arith.constant 5.000000e-01 : f32
    %158 = vector.broadcast %cst_55 : f32 to vector<8x128xf32>
    %159 = arith.addf %157, %158 : vector<8x128xf32>
    %160 = vector.extract_strided_slice %151 {offsets = [0, 128], sizes = [8, 128], strides = [1, 1]} : vector<8x512xf32> to vector<8x128xf32>
    %cst_56 = arith.constant 5.000000e-01 : f32
    %161 = vector.broadcast %cst_56 : f32 to vector<8x128xf32>
    %162 = arith.mulf %161, %160 : vector<8x128xf32>
    %163 = math.tanh %162 : vector<8x128xf32>
    %cst_57 = arith.constant 5.000000e-01 : f32
    %164 = vector.broadcast %cst_57 : f32 to vector<8x128xf32>
    %165 = arith.mulf %164, %163 : vector<8x128xf32>
    %cst_58 = arith.constant 5.000000e-01 : f32
    %166 = vector.broadcast %cst_58 : f32 to vector<8x128xf32>
    %167 = arith.addf %165, %166 : vector<8x128xf32>
    %168 = vector.extract_strided_slice %151 {offsets = [0, 256], sizes = [8, 128], strides = [1, 1]} : vector<8x512xf32> to vector<8x128xf32>
    %169 = math.tanh %168 : vector<8x128xf32>
    %170 = vector.extract_strided_slice %151 {offsets = [0, 384], sizes = [8, 128], strides = [1, 1]} : vector<8x512xf32> to vector<8x128xf32>
    %cst_59 = arith.constant 5.000000e-01 : f32
    %171 = vector.broadcast %cst_59 : f32 to vector<8x128xf32>
    %172 = arith.mulf %171, %170 : vector<8x128xf32>
    %173 = math.tanh %172 : vector<8x128xf32>
    %cst_60 = arith.constant 5.000000e-01 : f32
    %174 = vector.broadcast %cst_60 : f32 to vector<8x128xf32>
    %175 = arith.mulf %174, %173 : vector<8x128xf32>
    %cst_61 = arith.constant 5.000000e-01 : f32
    %176 = vector.broadcast %cst_61 : f32 to vector<8x128xf32>
    %177 = arith.addf %175, %176 : vector<8x128xf32>
    %178 = arith.mulf %167, %144 : vector<8x128xf32>
    %179 = arith.mulf %159, %169 : vector<8x128xf32>
    %180 = arith.addf %178, %179 : vector<8x128xf32>
    %181 = math.tanh %180 : vector<8x128xf32>
    %182 = arith.mulf %177, %181 : vector<8x128xf32>
    %c5_i32 = arith.constant 5 : i32
    %183 = arith.index_cast %c5_i32 : i32 to index
    %c0_62 = arith.constant 0 : index
    %c0_63 = arith.constant 0 : index
    %184 = vector.load %arg1[%183, %c0_62, %c0_63] : memref<8x8x512xf32, #tpu.memory_space<vmem>>, vector<1x8x512xf32>
    %185 = vector.shape_cast %184 : vector<1x8x512xf32> to vector<8x512xf32>
    %cst_64 = arith.constant dense<0.000000e+00> : vector<8x512xf32>
    %186 = tpu.matmul %182, %0, %cst_64 {dimension_numbers = #tpu.dot_dimension_numbers<[1], [0], [0], [1], [0, 0, 1, 1], [], []>} : vector<8x128xf32>, vector<128x512xf32>, vector<8x512xf32> -> vector<8x512xf32>
    %187 = arith.addf %185, %186 : vector<8x512xf32>
    %188 = vector.extract_strided_slice %187 {offsets = [0, 0], sizes = [8, 128], strides = [1, 1]} : vector<8x512xf32> to vector<8x128xf32>
    %cst_65 = arith.constant 5.000000e-01 : f32
    %189 = vector.broadcast %cst_65 : f32 to vector<8x128xf32>
    %190 = arith.mulf %189, %188 : vector<8x128xf32>
    %191 = math.tanh %190 : vector<8x128xf32>
    %cst_66 = arith.constant 5.000000e-01 : f32
    %192 = vector.broadcast %cst_66 : f32 to vector<8x128xf32>
    %193 = arith.mulf %192, %191 : vector<8x128xf32>
    %cst_67 = arith.constant 5.000000e-01 : f32
    %194 = vector.broadcast %cst_67 : f32 to vector<8x128xf32>
    %195 = arith.addf %193, %194 : vector<8x128xf32>
    %196 = vector.extract_strided_slice %187 {offsets = [0, 128], sizes = [8, 128], strides = [1, 1]} : vector<8x512xf32> to vector<8x128xf32>
    %cst_68 = arith.constant 5.000000e-01 : f32
    %197 = vector.broadcast %cst_68 : f32 to vector<8x128xf32>
    %198 = arith.mulf %197, %196 : vector<8x128xf32>
    %199 = math.tanh %198 : vector<8x128xf32>
    %cst_69 = arith.constant 5.000000e-01 : f32
    %200 = vector.broadcast %cst_69 : f32 to vector<8x128xf32>
    %201 = arith.mulf %200, %199 : vector<8x128xf32>
    %cst_70 = arith.constant 5.000000e-01 : f32
    %202 = vector.broadcast %cst_70 : f32 to vector<8x128xf32>
    %203 = arith.addf %201, %202 : vector<8x128xf32>
    %204 = vector.extract_strided_slice %187 {offsets = [0, 256], sizes = [8, 128], strides = [1, 1]} : vector<8x512xf32> to vector<8x128xf32>
    %205 = math.tanh %204 : vector<8x128xf32>
    %206 = vector.extract_strided_slice %187 {offsets = [0, 384], sizes = [8, 128], strides = [1, 1]} : vector<8x512xf32> to vector<8x128xf32>
    %cst_71 = arith.constant 5.000000e-01 : f32
    %207 = vector.broadcast %cst_71 : f32 to vector<8x128xf32>
    %208 = arith.mulf %207, %206 : vector<8x128xf32>
    %209 = math.tanh %208 : vector<8x128xf32>
    %cst_72 = arith.constant 5.000000e-01 : f32
    %210 = vector.broadcast %cst_72 : f32 to vector<8x128xf32>
    %211 = arith.mulf %210, %209 : vector<8x128xf32>
    %cst_73 = arith.constant 5.000000e-01 : f32
    %212 = vector.broadcast %cst_73 : f32 to vector<8x128xf32>
    %213 = arith.addf %211, %212 : vector<8x128xf32>
    %214 = arith.mulf %203, %180 : vector<8x128xf32>
    %215 = arith.mulf %195, %205 : vector<8x128xf32>
    %216 = arith.addf %214, %215 : vector<8x128xf32>
    %217 = math.tanh %216 : vector<8x128xf32>
    %218 = arith.mulf %213, %217 : vector<8x128xf32>
    %c6_i32 = arith.constant 6 : i32
    %219 = arith.index_cast %c6_i32 : i32 to index
    %c0_74 = arith.constant 0 : index
    %c0_75 = arith.constant 0 : index
    %220 = vector.load %arg1[%219, %c0_74, %c0_75] : memref<8x8x512xf32, #tpu.memory_space<vmem>>, vector<1x8x512xf32>
    %221 = vector.shape_cast %220 : vector<1x8x512xf32> to vector<8x512xf32>
    %cst_76 = arith.constant dense<0.000000e+00> : vector<8x512xf32>
    %222 = tpu.matmul %218, %0, %cst_76 {dimension_numbers = #tpu.dot_dimension_numbers<[1], [0], [0], [1], [0, 0, 1, 1], [], []>} : vector<8x128xf32>, vector<128x512xf32>, vector<8x512xf32> -> vector<8x512xf32>
    %223 = arith.addf %221, %222 : vector<8x512xf32>
    %224 = vector.extract_strided_slice %223 {offsets = [0, 0], sizes = [8, 128], strides = [1, 1]} : vector<8x512xf32> to vector<8x128xf32>
    %cst_77 = arith.constant 5.000000e-01 : f32
    %225 = vector.broadcast %cst_77 : f32 to vector<8x128xf32>
    %226 = arith.mulf %225, %224 : vector<8x128xf32>
    %227 = math.tanh %226 : vector<8x128xf32>
    %cst_78 = arith.constant 5.000000e-01 : f32
    %228 = vector.broadcast %cst_78 : f32 to vector<8x128xf32>
    %229 = arith.mulf %228, %227 : vector<8x128xf32>
    %cst_79 = arith.constant 5.000000e-01 : f32
    %230 = vector.broadcast %cst_79 : f32 to vector<8x128xf32>
    %231 = arith.addf %229, %230 : vector<8x128xf32>
    %232 = vector.extract_strided_slice %223 {offsets = [0, 128], sizes = [8, 128], strides = [1, 1]} : vector<8x512xf32> to vector<8x128xf32>
    %cst_80 = arith.constant 5.000000e-01 : f32
    %233 = vector.broadcast %cst_80 : f32 to vector<8x128xf32>
    %234 = arith.mulf %233, %232 : vector<8x128xf32>
    %235 = math.tanh %234 : vector<8x128xf32>
    %cst_81 = arith.constant 5.000000e-01 : f32
    %236 = vector.broadcast %cst_81 : f32 to vector<8x128xf32>
    %237 = arith.mulf %236, %235 : vector<8x128xf32>
    %cst_82 = arith.constant 5.000000e-01 : f32
    %238 = vector.broadcast %cst_82 : f32 to vector<8x128xf32>
    %239 = arith.addf %237, %238 : vector<8x128xf32>
    %240 = vector.extract_strided_slice %223 {offsets = [0, 256], sizes = [8, 128], strides = [1, 1]} : vector<8x512xf32> to vector<8x128xf32>
    %241 = math.tanh %240 : vector<8x128xf32>
    %242 = vector.extract_strided_slice %223 {offsets = [0, 384], sizes = [8, 128], strides = [1, 1]} : vector<8x512xf32> to vector<8x128xf32>
    %cst_83 = arith.constant 5.000000e-01 : f32
    %243 = vector.broadcast %cst_83 : f32 to vector<8x128xf32>
    %244 = arith.mulf %243, %242 : vector<8x128xf32>
    %245 = math.tanh %244 : vector<8x128xf32>
    %cst_84 = arith.constant 5.000000e-01 : f32
    %246 = vector.broadcast %cst_84 : f32 to vector<8x128xf32>
    %247 = arith.mulf %246, %245 : vector<8x128xf32>
    %cst_85 = arith.constant 5.000000e-01 : f32
    %248 = vector.broadcast %cst_85 : f32 to vector<8x128xf32>
    %249 = arith.addf %247, %248 : vector<8x128xf32>
    %250 = arith.mulf %239, %216 : vector<8x128xf32>
    %251 = arith.mulf %231, %241 : vector<8x128xf32>
    %252 = arith.addf %250, %251 : vector<8x128xf32>
    %253 = math.tanh %252 : vector<8x128xf32>
    %254 = arith.mulf %249, %253 : vector<8x128xf32>
    %c7_i32 = arith.constant 7 : i32
    %255 = arith.index_cast %c7_i32 : i32 to index
    %c0_86 = arith.constant 0 : index
    %c0_87 = arith.constant 0 : index
    %256 = vector.load %arg1[%255, %c0_86, %c0_87] : memref<8x8x512xf32, #tpu.memory_space<vmem>>, vector<1x8x512xf32>
    %257 = vector.shape_cast %256 : vector<1x8x512xf32> to vector<8x512xf32>
    %cst_88 = arith.constant dense<0.000000e+00> : vector<8x512xf32>
    %258 = tpu.matmul %254, %0, %cst_88 {dimension_numbers = #tpu.dot_dimension_numbers<[1], [0], [0], [1], [0, 0, 1, 1], [], []>} : vector<8x128xf32>, vector<128x512xf32>, vector<8x512xf32> -> vector<8x512xf32>
    %259 = arith.addf %257, %258 : vector<8x512xf32>
    %260 = vector.extract_strided_slice %259 {offsets = [0, 0], sizes = [8, 128], strides = [1, 1]} : vector<8x512xf32> to vector<8x128xf32>
    %cst_89 = arith.constant 5.000000e-01 : f32
    %261 = vector.broadcast %cst_89 : f32 to vector<8x128xf32>
    %262 = arith.mulf %261, %260 : vector<8x128xf32>
    %263 = math.tanh %262 : vector<8x128xf32>
    %cst_90 = arith.constant 5.000000e-01 : f32
    %264 = vector.broadcast %cst_90 : f32 to vector<8x128xf32>
    %265 = arith.mulf %264, %263 : vector<8x128xf32>
    %cst_91 = arith.constant 5.000000e-01 : f32
    %266 = vector.broadcast %cst_91 : f32 to vector<8x128xf32>
    %267 = arith.addf %265, %266 : vector<8x128xf32>
    %268 = vector.extract_strided_slice %259 {offsets = [0, 128], sizes = [8, 128], strides = [1, 1]} : vector<8x512xf32> to vector<8x128xf32>
    %cst_92 = arith.constant 5.000000e-01 : f32
    %269 = vector.broadcast %cst_92 : f32 to vector<8x128xf32>
    %270 = arith.mulf %269, %268 : vector<8x128xf32>
    %271 = math.tanh %270 : vector<8x128xf32>
    %cst_93 = arith.constant 5.000000e-01 : f32
    %272 = vector.broadcast %cst_93 : f32 to vector<8x128xf32>
    %273 = arith.mulf %272, %271 : vector<8x128xf32>
    %cst_94 = arith.constant 5.000000e-01 : f32
    %274 = vector.broadcast %cst_94 : f32 to vector<8x128xf32>
    %275 = arith.addf %273, %274 : vector<8x128xf32>
    %276 = vector.extract_strided_slice %259 {offsets = [0, 256], sizes = [8, 128], strides = [1, 1]} : vector<8x512xf32> to vector<8x128xf32>
    %277 = math.tanh %276 : vector<8x128xf32>
    %278 = vector.extract_strided_slice %259 {offsets = [0, 384], sizes = [8, 128], strides = [1, 1]} : vector<8x512xf32> to vector<8x128xf32>
    %cst_95 = arith.constant 5.000000e-01 : f32
    %279 = vector.broadcast %cst_95 : f32 to vector<8x128xf32>
    %280 = arith.mulf %279, %278 : vector<8x128xf32>
    %281 = math.tanh %280 : vector<8x128xf32>
    %cst_96 = arith.constant 5.000000e-01 : f32
    %282 = vector.broadcast %cst_96 : f32 to vector<8x128xf32>
    %283 = arith.mulf %282, %281 : vector<8x128xf32>
    %cst_97 = arith.constant 5.000000e-01 : f32
    %284 = vector.broadcast %cst_97 : f32 to vector<8x128xf32>
    %285 = arith.addf %283, %284 : vector<8x128xf32>
    %286 = arith.mulf %275, %252 : vector<8x128xf32>
    %287 = arith.mulf %267, %277 : vector<8x128xf32>
    %288 = arith.addf %286, %287 : vector<8x128xf32>
    %289 = math.tanh %288 : vector<8x128xf32>
    %290 = arith.mulf %285, %289 : vector<8x128xf32>
    %c8_i32 = arith.constant 8 : i32
    %c0_98 = arith.constant 0 : index
    %c0_99 = arith.constant 0 : index
    %291 = vector.load %arg3[%c0_98, %c0_99] : memref<128x64xf32, #tpu.memory_space<vmem>>, vector<128x64xf32>
    %cst_100 = arith.constant dense<0.000000e+00> : vector<8x64xf32>
    %292 = tpu.matmul %290, %291, %cst_100 {dimension_numbers = #tpu.dot_dimension_numbers<[1], [0], [0], [1], [0, 0, 1, 1], [], []>} : vector<8x128xf32>, vector<128x64xf32>, vector<8x64xf32> -> vector<8x64xf32>
    %c0_101 = arith.constant 0 : index
    %c0_102 = arith.constant 0 : index
    %293 = vector.load %arg4[%c0_101, %c0_102] : memref<1x64xf32, #tpu.memory_space<vmem>>, vector<1x64xf32>
    %294 = vector.broadcast %293 : vector<1x64xf32> to vector<8x64xf32>
    %295 = arith.addf %292, %294 : vector<8x64xf32>
    %296 = math.tanh %295 : vector<8x64xf32>
    %c0_103 = arith.constant 0 : index
    %c0_104 = arith.constant 0 : index
    %297 = vector.load %arg5[%c0_103, %c0_104] : memref<64x10xf32, #tpu.memory_space<vmem>>, vector<64x10xf32>
    %cst_105 = arith.constant dense<0.000000e+00> : vector<8x10xf32>
    %298 = tpu.matmul %296, %297, %cst_105 {dimension_numbers = #tpu.dot_dimension_numbers<[1], [0], [0], [1], [0, 0, 1, 1], [], []>} : vector<8x64xf32>, vector<64x10xf32>, vector<8x10xf32> -> vector<8x10xf32>
    %c0_106 = arith.constant 0 : index
    %c0_107 = arith.constant 0 : index
    %299 = vector.load %arg6[%c0_106, %c0_107] : memref<1x10xf32, #tpu.memory_space<vmem>>, vector<1x10xf32>
    %300 = vector.broadcast %299 : vector<1x10xf32> to vector<8x10xf32>
    %301 = arith.addf %298, %300 : vector<8x10xf32>
    %c0_108 = arith.constant 0 : index
    %c0_109 = arith.constant 0 : index
    %302 = vector.load %arg7[%c0_108, %c0_109] : memref<8x10xf32, #tpu.memory_space<vmem>>, vector<8x10xf32>
    tpu.vector_store %arg7[%c0_108, %c0_109], %301 {strides = array<i32>} : memref<8x10xf32, #tpu.memory_space<vmem>>, vector<8x10xf32>,
    return
  }
  func.func @transform_0(%arg0: i32) -> (i32, i32, i32) {
    %c0_i32 = arith.constant 0 : i32
    %c0_i32_0 = arith.constant 0 : i32
    %c0_i32_1 = arith.constant 0 : i32
    return %c0_i32, %arg0, %c0_i32_0 : i32, i32, i32
  }
  func.func @transform_1(%arg0: i32) -> (i32, i32) {
    %c0_i32 = arith.constant 0 : i32
    %c0_i32_0 = arith.constant 0 : i32
    %c0_i32_1 = arith.constant 0 : i32
    return %c0_i32, %c0_i32_0 : i32, i32
  }
  func.func @transform_2(%arg0: i32) -> (i32, i32) {
    %c0_i32 = arith.constant 0 : i32
    %c0_i32_0 = arith.constant 0 : i32
    %c0_i32_1 = arith.constant 0 : i32
    return %c0_i32, %c0_i32_0 : i32, i32
  }
  func.func @transform_3(%arg0: i32) -> (i32, i32) {
    %c0_i32 = arith.constant 0 : i32
    %c0_i32_0 = arith.constant 0 : i32
    %c0_i32_1 = arith.constant 0 : i32
    return %c0_i32, %c0_i32_0 : i32, i32
  }
  func.func @transform_4(%arg0: i32) -> (i32, i32) {
    %c0_i32 = arith.constant 0 : i32
    %c0_i32_0 = arith.constant 0 : i32
    %c0_i32_1 = arith.constant 0 : i32
    return %c0_i32, %c0_i32_0 : i32, i32
  }
  func.func @transform_5(%arg0: i32) -> (i32, i32) {
    %c0_i32 = arith.constant 0 : i32
    %c0_i32_0 = arith.constant 0 : i32
    %c0_i32_1 = arith.constant 0 : i32
    return %c0_i32, %c0_i32_0 : i32, i32
  }
  func.func @transform_6(%arg0: i32) -> (i32, i32) {
    %c0_i32 = arith.constant 0 : i32
    %c0_i32_0 = arith.constant 0 : i32
    return %arg0, %c0_i32 : i32, i32
  }
}

</mosaic_0001>

<bundles_post_ra>
// kernel: tpu_custom_call.1
= control target key start
LH: loop header
LB: loop body
LE: loop exit
PB: predicated region body
PF: predicated region fallthrough
CT: control target
= control target key end

     0   :  { %s2859_s0 = inlined_call_operand.hbm [shape: f32[8,16,512], index: 0, kind: input, shape index: {}]   ;;  %s2860_s1 = inlined_call_operand.hbm [shape: f32[128,512], index: 1, kind: input, shape index: {}]   ;;  %s2861_s2 = inlined_call_operand.vmem [shape: f32[128,64], index: 2, kind: input, shape index: {}]   ;;  %s2862_s3 = inlined_call_operand.vmem [shape: f32[1,64], index: 3, kind: input, shape index: {}]   ;;  %s2863_s4 = inlined_call_operand.vmem [shape: f32[64,10], index: 4, kind: input, shape index: {}]   ;;  %s2864_s5 = inlined_call_operand.vmem [shape: f32[1,10], index: 5, kind: input, shape index: {}]   ;;  %s2865_s6 = inlined_call_operand.hbm [shape: f32[16,10], index: 6, kind: output, shape index: {}]  }
   0x1   :  { %2932 = sst [smem:[#allocation32_spill]] %s2860_s1 }
   0x2   :  { %11 = vsyncpa [#allocation3], 0 }
   0x3   :  { %13 = vsyncpa [#allocation3 + $0x1], 0 }
   0x4   :  { %14 = vsyncpa [#allocation6], 0 }
   0x5   :  { %15 = vsyncpa [#allocation4], 0 }
   0x6   :  { %17 = vsyncpa [#allocation4 + $0x1], 0  ;;  %s1809_s21 = smov 0   ;;  %s1811_s22 = smov 0  }
   0x7   :  { %s1813_s23 = smov 0   ;;  %s1815_s24 = smov 0  }
   0x8 LB: > { %s1830_s25 = sadd.s32 4294967295, %s1767_s24   ;;  %s1383_s26 = sadd.s32 4294967294, %s1767_s24   ;;  %s1767_s24 = sphi %s1815_s24, %s3071_s24   ;;  %s1763_s23 = sphi %s1813_s23, %s3070_s23   ;;  %s1759_s22 = sphi %s1811_s22, %s3069_s22   ;;  %s1755_s21 = sphi %s1809_s21, %s3068_s21  }
   0x9   : > { %p43_p0 = scmp.ne.s32.totalorder %s1759_s22, %s1755_s21  ;;  %p44_p1 = scmp.eq.s32.totalorder %s1830_s25, 0 }
   0xa   : > { %p172_p2 = scmp.eq.s32.totalorder %s1830_s25, 1  ;;  %p178_p3 = scmp.eq.s32.totalorder %s1383_s26, 1 }
   0xb   : > { %p1839_p4 = por %p44_p1, %p43_p0  ;;  %p1384_p5 = scmp.ge.s32.totalorder %s1767_s24, 1 }
   0xc   : > { %p1844_p6 = por %p178_p3, %p43_p0  ;;  %p185_p7 = scmp.lt.s32.totalorder %s1767_s24, 3 }
   0xd   : > { %s2935_s1 = sld [smem:[#allocation32_spill]]  ;;  %s1769_s9 = smov [#allocation5]  }
   0xe   : > { %p1852_p8 = pnand %p1384_p5, %p185_p7  ;;  %s198_s10 = sshll.u32 %s1769_s9, 4  ;;  %s199_s10 = int_to_ptr.vmem [resolvable:$true] %s198_s10 }
   0xf   : > { %s1862_s11 = sadd.s32 1, %s1767_s24   ;;  %s2866_s12 = smov 512  }
  0x10   : > { %p1436_p9 = pneg %p1852_p8  ;;  %s2867_s13 = smov 32  }
  0x11   : > { %s27_s14 = ssub.s32 %s1767_s24, %s1862_s11  ;;  %s30_s15 = sadd.s32 1, %s1763_s23 }
  0x12   : > { %p1437_p10 = pnand %p1436_p9, %p44_p1  ;;  %p28_p12 = scmp.eq.s32.totalorder %s27_s14, 0 }
  0x13   : > { %s196_s7 = sshll.u32 %s2935_s1, 4  ;;  %p37_p13 = scmp.ne.s32.totalorder %s1763_s23, %s1759_s22  ;;  %s197_s7 = int_to_ptr.hbm [resolvable:$true] %s196_s7 }
  0x14   : > { %1439 = dma.hbm_to_vmem [thread:$0]  (!%p1437_p10), %s197_s7, 8192, %s199_s10, [#allocation6], %s2866_s12, %s2866_s12, %s2867_s13  }
  0x15   : > { %p38_p0 = scmp.eq.s32.totalorder %s1767_s24, 0  ;;  %p1449_p3 = scmp.lt.s32.totalorder %s1767_s24, 2 }
  0x16   : > { %s1875_s16 = scalar_select %p28_p12, %s1763_s23, %s30_s15  }
  0x17   : > { %p39_p5 = por %p38_p0, %p37_p13  ;;  %p1879_p7 = por %p172_p2, %p37_p13 }
  0x18   : > { %s224_s18 = sand.u32 1, %s1763_s23   ;;  %s1427_s19 = sshll.u32 %s1767_s24, 5 }
  0x19   : > { %s1387_s20 = sshll.u32 %s224_s18, 8  ;;  %s233_s30 = scalar_lea.hbm %s2859_s0, %s1427_s19 }
  0x1a   : > { %s234_s7 = sshll.u32 %s233_s30, 4  ;;  %s228_s9 = scalar_lea.vmem [#allocation2], %s1387_s20  ;;  %s235_s7 = int_to_ptr.hbm [resolvable:$true] %s234_s7 }
  0x1b   : > { %s236_s10 = sshll.u32 %s228_s9, 4  ;;  %p1890_p9 = pnand %p1449_p3, %p39_p5  ;;  %s237_s10 = int_to_ptr.vmem [resolvable:$true] %s236_s10 }
  0x1c   : > { %s225_s15 = scalar_lea.sflag [#allocation3], %s224_s18  ;;  %s1667_s12 = sshra.s32 %s235_s7, 4  ;;  %s1668_s12 = int_to_ptr.hbm [resolvable:$true] %s1667_s12 }
  0x1d   : > { %s1669_s13 = scalar_lea.hbm %s1668_s12, 256  ;;  %p1671_p10 = pneg %p1890_p9 }
  0x1e   : > { %p1670_p2 = scmp.ne.s32.totalorder %s1668_s12, %s1669_s13  ;;  %s1674_s26 = scalar_lea.hbm %s2859_s0, 512 }
  0x1f   : > { %p1675_p0 = scmp.lt.s32.totalorder %s1668_s12, %s2859_s0  ;;  %p1676_p3 = scmp.lt.s32.totalorder %s1674_s26, %s1669_s13 }
  0x20   : > { %p1672_p12 = pnand %p1671_p10, %p1670_p2 }
  0x21   : > { %p1677_p5 = por %p1676_p3, %p1675_p0 }
  0x22   : > { %p1673_p13 = pneg %p1672_p12 }
  0x24   : > { %p1678_p11 = pnand %p1677_p5, %p1673_p13 }
  0x26   : > { %1681 = shalt.err (!%p1678_p11)
}
  0x27   : > { %s1772_s18 = smov 1024   ;;  %s2939_s9 = smov 32  }
  0x28   : > { %s2940_s1 = smov 512   ;;  %248 = sbr.rel (%p1852_p8) target bundleno = 1589 (0x635), region = 44 }
  0x29   : > { %1443 = dma.hbm_to_vmem [thread:$0]  (!%p1890_p9), %s235_s7, 4096, %s237_s10, %s225_s15, %s1772_s18, %s2940_s1, %s2939_s9  }
  0x2d   : > { %s1909_s19 = sand.u32 1, %s1759_s22  }
  0x2e   : > { %s1391_s12 = sshll.u32 %s1909_s19, 8  ;;  %s251_s13 = scalar_lea.sflag [#allocation3], %s1909_s19 }
  0x2f   : > { %s1913_s20 = scalar_lea.vmem [#allocation2], %s1391_s12 }
  0x30   : > { %1742 = dma.done.wait (%p1839_p4), %s251_s13, 4096  }
  0x31   : > { %1744 = vsyncadd (%p1839_p4), %s251_s13, 4294963200 }
  0x32   : > { %1746 = dma.done.wait (%p44_p1), [#allocation6], 8192  }
  0x33   : > { %1748 = vsyncadd (%p44_p1), [#allocation6], 4294959104  ;;  %v1923_v0 = vld [vmem:[#allocation5 + $0x1e0] sm:$0xff]  ;;  %v1925_v1 = vld [vmem:[#allocation5 + $0x1e8] sm:$0xff]  ;;  %v1773_v63 = vmov 0.0   ;;  %vm1261_vm0 = vcmask 523264  }
  0x34   : > { %v1927_v2 = vld [vmem:[#allocation5 + $0x1f0] sm:$0xff]  ;;  %357 = vmatpush.msra.mxu0 %v1923_v0  ;;  %377 = vmatpush.msra.mxu1 %v1925_v1  ;;  %v1931_v3 = vld [vmem:[#allocation5 + $0x1c0] sm:$0xff]  ;;  %v1933_v4 = vld [vmem:[#allocation5 + $0x1c8] sm:$0xff]  ;;  %s1393_s26 = sshll.u32 %s1909_s19, 3  ;;  %s1424_s29 = sshll.u32 %s1830_s25, 3  ;;  %vm1285_vm1 = vcmask 80896  }
  0x35   : > { %v1935_v5 = vld [vmem:[#allocation5 + $0x1d0] sm:$0xff]  ;;  %397 = vmatpush.msra.mxu2 %v1927_v2  ;;  %v1938_v6 = vld [vmem:[#allocation5 + $0x1a0] sm:$0xff]  ;;  %v1940_v7 = vld [vmem:[#allocation5 + $0x1a8] sm:$0xff]  ;;  %s1298_s18 = scalar_lea.hbm %s2865_s6, %s1424_s29  ;;  %s288_s13 = scalar_lea.vmem [#allocation7], %s1393_s26 }
  0x36   : > { %358 = vmatpush.msra.mxu0 %v1931_v3  ;;  %378 = vmatpush.msra.mxu1 %v1933_v4  ;;  %v1944_v8 = vld [vmem:[#allocation5 + $0x1b0] sm:$0xff]  ;;  %v1946_v9 = vld [vmem:[#allocation5 + $0x1f8] sm:$0xff]  ;;  %v1950_v10 = vld [vmem:[#allocation5 + $0x180] sm:$0xff]  ;;  %s1300_s1 = sshll.u32 %s288_s13, 4  ;;  %s1302_s27 = sshll.u32 %s1298_s18, 4  ;;  %s1301_s1 = int_to_ptr.vmem [resolvable:$true] %s1300_s1  ;;  %s1303_s27 = int_to_ptr.hbm [resolvable:$true] %s1302_s27 }
  0x37   : > { %398 = vmatpush.msra.mxu2 %v1935_v5  ;;  %417 = vmatpush.msra.mxu3 %v1946_v9  ;;  %v1952_v11 = vld [vmem:[#allocation5 + $0x188] sm:$0xff]  ;;  %v1954_v12 = vld [vmem:[#allocation5 + $0x1d8] sm:$0xff]  ;;  %v1958_v13 = vld [vmem:[#allocation5 + $0x190] sm:$0xff]  ;;  %s1288_s8 = scalar_lea.sflag [#allocation4], %s1909_s19  ;;  %s1711_s25 = sshra.s32 %s1303_s27, 4  ;;  %s1712_s25 = int_to_ptr.hbm [resolvable:$true] %s1711_s25 }
  0x38   : > { %359 = vmatpush.msra.mxu0 %v1938_v6  ;;  %379 = vmatpush.msra.mxu1 %v1940_v7  ;;  %v1960_v14 = vld [vmem:[#allocation5 + $0x1b8] sm:$0xff]  ;;  %v1964_v15 = vld [vmem:[#allocation5 + $0x160] sm:$0xff]  ;;  %v1966_v16 = vld [vmem:[#allocation5 + $0x168] sm:$0xff]  ;;  %s1713_s7 = scalar_lea.hbm %s1712_s25, 8  ;;  %s1717_s15 = scalar_lea.hbm %s2865_s6, 16 }
  0x39   : > { %399 = vmatpush.msra.mxu2 %v1944_v8  ;;  %418 = vmatpush.msra.mxu3 %v1954_v12  ;;  %v1970_v17 = vld [vmem:[#allocation5 + $0x170] sm:$0xff]  ;;  %v1972_v18 = vld [vmem:[#allocation5 + $0x198] sm:$0xff]  ;;  %v1976_v19 = vld [vmem:[#allocation5 + $0x140] sm:$0xff]  ;;  %p1714_p1 = scmp.ne.s32.totalorder %s1712_s25, %s1713_s7  ;;  %p1718_p11 = scmp.lt.s32.totalorder %s1712_s25, %s2865_s6 }
  0x3a   : > { %360 = vmatpush.msra.mxu0 %v1950_v10  ;;  %380 = vmatpush.msra.mxu1 %v1952_v11  ;;  %v1978_v20 = vld [vmem:[#allocation5 + $0x148] sm:$0xff]  ;;  %v1982_v21 = vld [vmem:[#allocation5 + $0x150] sm:$0xff]  ;;  %v1984_v22 = vld [vmem:[#allocation5 + $0x178] sm:$0xff]  ;;  %p1719_p9 = scmp.lt.s32.totalorder %s1717_s15, %s1713_s7 }
  0x3b   : > { %400 = vmatpush.msra.mxu2 %v1958_v13  ;;  %419 = vmatpush.msra.mxu3 %v1960_v14  ;;  %v1988_v23 = vld [vmem:[#allocation5 + $0x120] sm:$0xff]  ;;  %v1990_v24 = vld [vmem:[#allocation5 + $0x128] sm:$0xff]  ;;  %v1994_v25 = vld [vmem:[#allocation5 + $0x130] sm:$0xff]  ;;  %p1715_p4 = pnand %p1714_p1, %p1879_p7 }
  0x3c   : > { %361 = vmatpush.msra.mxu0 %v1964_v15  ;;  %381 = vmatpush.msra.mxu1 %v1966_v16  ;;  %v1996_v26 = vld [vmem:[#allocation5 + $0x158] sm:$0xff]  ;;  %v2000_v27 = vld [vmem:[#allocation5 + $0x100] sm:$0xff]  ;;  %v2002_v28 = vld [vmem:[#allocation5 + $0x108] sm:$0xff]  ;;  %p1720_p2 = por %p1719_p9, %p1718_p11 }
  0x3d   : > { %401 = vmatpush.msra.mxu2 %v1970_v17  ;;  %420 = vmatpush.msra.mxu3 %v1972_v18  ;;  %v2006_v29 = vld [vmem:[#allocation5 + $0x110] sm:$0xff]  ;;  %v2008_v30 = vld [vmem:[#allocation5 + $0x138] sm:$0xff]  ;;  %v2012_v31 = vld [vmem:[#allocation5 + $0xe0] sm:$0xff]  ;;  %p1716_p8 = pneg %p1715_p4 }
  0x3e   : > { %362 = vmatpush.msra.mxu0 %v1976_v19  ;;  %382 = vmatpush.msra.mxu1 %v1978_v20  ;;  %v2014_v32 = vld [vmem:[#allocation5 + $0xe8] sm:$0xff]  ;;  %v2018_v33 = vld [vmem:[#allocation5 + $0xf0] sm:$0xff]  ;;  %v2020_v34 = vld [vmem:[#allocation5 + $0x118] sm:$0xff] }
  0x3f   : > { %402 = vmatpush.msra.mxu2 %v1982_v21  ;;  %421 = vmatpush.msra.mxu3 %v1984_v22  ;;  %v2024_v35 = vld [vmem:[#allocation5 + $0xc0] sm:$0xff]  ;;  %v2026_v36 = vld [vmem:[#allocation5 + $0xc8] sm:$0xff]  ;;  %v2030_v37 = vld [vmem:[#allocation5 + $0xd0] sm:$0xff]  ;;  %p1721_p10 = pnand %p1720_p2, %p1716_p8 }
  0x40   : > { %363 = vmatpush.msra.mxu0 %v1988_v23  ;;  %383 = vmatpush.msra.mxu1 %v1990_v24  ;;  %v2032_v38 = vld [vmem:[#allocation5 + $0xf8] sm:$0xff]  ;;  %v2036_v39 = vld [vmem:[#allocation5 + $0xa0] sm:$0xff]  ;;  %v2038_v40 = vld [vmem:[#allocation5 + $0xa8] sm:$0xff] }
  0x41   : > { %403 = vmatpush.msra.mxu2 %v1994_v25  ;;  %422 = vmatpush.msra.mxu3 %v1996_v26  ;;  %v2042_v41 = vld [vmem:[#allocation5 + $0xb0] sm:$0xff]  ;;  %v2044_v42 = vld [vmem:[#allocation5 + $0xd8] sm:$0xff]  ;;  %v2048_v43 = vld [vmem:[#allocation5 + $0x80] sm:$0xff] }
  0x42   : > { %364 = vmatpush.msra.mxu0 %v2000_v27  ;;  %384 = vmatpush.msra.mxu1 %v2002_v28  ;;  %2941 = vst [vmem:[#allocation11_spill] sm:$0xff] %v2048_v43  ;;  %v2050_v44 = vld [vmem:[#allocation5 + $0x88] sm:$0xff]  ;;  %v2054_v45 = vld [vmem:[#allocation5 + $0x90] sm:$0xff]  ;;  %v2056_v46 = vld [vmem:[#allocation5 + $0xb8] sm:$0xff] }
  0x43   : > { %404 = vmatpush.msra.mxu2 %v2006_v29  ;;  %423 = vmatpush.msra.mxu3 %v2008_v30  ;;  %2942 = vst [vmem:[#allocation12_spill] sm:$0xff] %v2050_v44  ;;  %v2060_v47 = vld [vmem:[#allocation5 + $0x60] sm:$0xff]  ;;  %v2062_v48 = vld [vmem:[#allocation5 + $0x68] sm:$0xff]  ;;  %v2066_v49 = vld [vmem:[#allocation5 + $0x70] sm:$0xff] }
  0x44   : > { %365 = vmatpush.msra.mxu0 %v2012_v31  ;;  %385 = vmatpush.msra.mxu1 %v2014_v32  ;;  %2943 = vst [vmem:[#allocation13_spill] sm:$0xff] %v2054_v45  ;;  %v2068_v50 = vld [vmem:[#allocation5 + $0x98] sm:$0xff]  ;;  %v2072_v51 = vld [vmem:[#allocation5 + $0x40] sm:$0xff]  ;;  %v2074_v52 = vld [vmem:[#allocation5 + $0x48] sm:$0xff] }
  0x45   : > { %405 = vmatpush.msra.mxu2 %v2018_v33  ;;  %424 = vmatpush.msra.mxu3 %v2020_v34  ;;  %2944 = vst [vmem:[#allocation14_spill] sm:$0xff] %v2056_v46  ;;  %v2078_v53 = vld [vmem:[#allocation5 + $0x50] sm:$0xff]  ;;  %v2080_v54 = vld [vmem:[#allocation5 + $0x78] sm:$0xff]  ;;  %v2084_v55 = vld [vmem:[#allocation5 + $0x20] sm:$0xff] }
  0x46   : > { %366 = vmatpush.msra.mxu0 %v2024_v35  ;;  %386 = vmatpush.msra.mxu1 %v2026_v36  ;;  %2945 = vst [vmem:[#allocation15_spill] sm:$0xff] %v2060_v47  ;;  %v2086_v56 = vld [vmem:[#allocation5 + $0x28] sm:$0xff]  ;;  %v2090_v57 = vld [vmem:[#allocation5 + $0x30] sm:$0xff]  ;;  %v2092_v58 = vld [vmem:[#allocation5 + $0x58] sm:$0xff] }
  0x47   : > { %406 = vmatpush.msra.mxu2 %v2030_v37  ;;  %425 = vmatpush.msra.mxu3 %v2032_v38  ;;  %2946 = vst [vmem:[#allocation16_spill] sm:$0xff] %v2062_v48  ;;  %v2096_v59 = vld [vmem:[#allocation5] sm:$0xff]  ;;  %v2098_v60 = vld [vmem:[#allocation5 + $0x8] sm:$0xff]  ;;  %v2102_v61 = vld [vmem:[#allocation5 + $0x10] sm:$0xff] }
  0x48   : > { %367 = vmatpush.msra.mxu0 %v2036_v39  ;;  %387 = vmatpush.msra.mxu1 %v2038_v40  ;;  %2947 = vst [vmem:[#allocation17_spill] sm:$0xff] %v2066_v49  ;;  %v2108_v62 = vld [vmem:[#allocation5 + $0x38] sm:$0xff] }
  0x49   : > { %407 = vmatpush.msra.mxu2 %v2042_v41  ;;  %426 = vmatpush.msra.mxu3 %v2044_v42  ;;  %2948 = vst [vmem:[#allocation18_spill] sm:$0xff] %v2068_v50 }
  0x4a   : > { %368 = vmatpush.msra.mxu0 %v2048_v43  ;;  %388 = vmatpush.msra.mxu1 %v2050_v44  ;;  %2949 = vst [vmem:[#allocation19_spill] sm:$0xff] %v2072_v51 }
  0x4b   : > { %408 = vmatpush.msra.mxu2 %v2054_v45  ;;  %427 = vmatpush.msra.mxu3 %v2056_v46  ;;  %2950 = vst [vmem:[#allocation20_spill] sm:$0xff] %v2074_v52 }
  0x4c   : > { %369 = vmatpush.msra.mxu0 %v2060_v47  ;;  %389 = vmatpush.msra.mxu1 %v2062_v48  ;;  %2951 = vst [vmem:[#allocation21_spill] sm:$0xff] %v2078_v53 }
  0x4d   : > { %2952 = vst [vmem:[#allocation22_spill] sm:$0xff] %v2080_v54  ;;  %409 = vmatpush.msra.mxu2 %v2066_v49  ;;  %428 = vmatpush.msra.mxu3 %v2068_v50 }
  0x4e   : > { %2953 = vst [vmem:[#allocation23_spill] sm:$0xff] %v2084_v55  ;;  %370 = vmatpush.msra.mxu0 %v2072_v51  ;;  %390 = vmatpush.msra.mxu1 %v2074_v52 }
  0x4f   : > { %2954 = vst [vmem:[#allocation24_spill] sm:$0xff] %v2086_v56  ;;  %410 = vmatpush.msra.mxu2 %v2078_v53  ;;  %429 = vmatpush.msra.mxu3 %v2080_v54 }
  0x50   : > { %2955 = vst [vmem:[#allocation25_spill] sm:$0xff] %v2090_v57  ;;  %371 = vmatpush.msra.mxu0 %v2084_v55  ;;  %391 = vmatpush.msra.mxu1 %v2086_v56  ;;  %v2111_v55 = vld [vmem:[#allocation5 + $0x18] sm:$0xff] }
  0x51   : > { %2956 = vst [vmem:[#allocation26_spill] sm:$0xff] %v2092_v58  ;;  %411 = vmatpush.msra.mxu2 %v2090_v57  ;;  %430 = vmatpush.msra.mxu3 %v2092_v58 }
  0x52   : > { %2957 = vst [vmem:[#allocation27_spill] sm:$0xff] %v2096_v59  ;;  %372 = vmatpush.msra.mxu0 %v2096_v59  ;;  %392 = vmatpush.msra.mxu1 %v2098_v60 }
  0x53   : > { %2958 = vst [vmem:[#allocation28_spill] sm:$0xff] %v2098_v60  ;;  %412 = vmatpush.msra.mxu2 %v2102_v61  ;;  %373 = vmatmul.f32.vlgmr.msra.gmra.mxu0 %v1773_v63 }
  0x54   : > { %2959 = vst [vmem:[#allocation29_spill] sm:$0xff] %v2102_v61  ;;  %393 = vmatmul.f32.vlgmr.msra.gmra.mxu1 %v1773_v63  ;;  %413 = vmatmul.f32.vlgmr.msra.gmra.mxu2 %v1773_v63 }
  0x55   : > { %2960 = vst [vmem:[#allocation30_spill] sm:$0xff] %v2108_v62  ;;  %431 = vmatpush.msra.mxu3 %v2108_v62  ;;  %464 = vmatpush.msrb.mxu0 %v1923_v0 }
  0x56   : > { %2961 = vst [vmem:[#allocation31_spill] sm:$0xff] %v2111_v55  ;;  %484 = vmatpush.msrb.mxu1 %v1925_v1  ;;  %504 = vmatpush.msrb.mxu2 %v1927_v2 }
  0x57   : > { %432 = vmatpush.msra.mxu3 %v2111_v55  ;;  %465 = vmatpush.msrb.mxu0 %v1931_v3 }
  0x58   : > { %433 = vmatmul.f32.vlgmr.msra.gmra.mxu3 %v1773_v63  ;;  %485 = vmatpush.msrb.mxu1 %v1933_v4  ;;  %v2962_v63 = vld [vmem:[#allocation23_spill] sm:$0xff] }
  0x59   : > { %524 = vmatpush.msrb.mxu3 %v1946_v9  ;;  %505 = vmatpush.msrb.mxu2 %v1935_v5 }
  0x5a   : > { %466 = vmatpush.msrb.mxu0 %v1938_v6  ;;  %486 = vmatpush.msrb.mxu1 %v1940_v7 }
  0x5b   : > { %525 = vmatpush.msrb.mxu3 %v1954_v12  ;;  %506 = vmatpush.msrb.mxu2 %v1944_v8 }
  0x5c   : > { %467 = vmatpush.msrb.mxu0 %v1950_v10  ;;  %487 = vmatpush.msrb.mxu1 %v1952_v11 }
  0x5d   : > { %526 = vmatpush.msrb.mxu3 %v1960_v14  ;;  %507 = vmatpush.msrb.mxu2 %v1958_v13 }
  0x5e   : > { %468 = vmatpush.msrb.mxu0 %v1964_v15  ;;  %488 = vmatpush.msrb.mxu1 %v1966_v16 }
  0x5f   : > { %527 = vmatpush.msrb.mxu3 %v1972_v18  ;;  %508 = vmatpush.msrb.mxu2 %v1970_v17 }
  0x60   : > { %469 = vmatpush.msrb.mxu0 %v1976_v19  ;;  %489 = vmatpush.msrb.mxu1 %v1978_v20 }
  0x61   : > { %528 = vmatpush.msrb.mxu3 %v1984_v22  ;;  %509 = vmatpush.msrb.mxu2 %v1982_v21 }
  0x62   : > { %470 = vmatpush.msrb.mxu0 %v1988_v23  ;;  %490 = vmatpush.msrb.mxu1 %v1990_v24 }
  0x63   : > { %529 = vmatpush.msrb.mxu3 %v1996_v26  ;;  %510 = vmatpush.msrb.mxu2 %v1994_v25 }
  0x64   : > { %471 = vmatpush.msrb.mxu0 %v2000_v27  ;;  %491 = vmatpush.msrb.mxu1 %v2002_v28 }
  0x65   : > { %530 = vmatpush.msrb.mxu3 %v2008_v30  ;;  %511 = vmatpush.msrb.mxu2 %v2006_v29 }
  0x66   : > { %472 = vmatpush.msrb.mxu0 %v2012_v31  ;;  %492 = vmatpush.msrb.mxu1 %v2014_v32 }
  0x67   : > { %531 = vmatpush.msrb.mxu3 %v2020_v34  ;;  %512 = vmatpush.msrb.mxu2 %v2018_v33 }
  0x68   : > { %473 = vmatpush.msrb.mxu0 %v2024_v35  ;;  %493 = vmatpush.msrb.mxu1 %v2026_v36 }
  0x69   : > { %532 = vmatpush.msrb.mxu3 %v2032_v38  ;;  %513 = vmatpush.msrb.mxu2 %v2030_v37 }
  0x6a   : > { %474 = vmatpush.msrb.mxu0 %v2036_v39  ;;  %494 = vmatpush.msrb.mxu1 %v2038_v40 }
  0x6b   : > { %533 = vmatpush.msrb.mxu3 %v2044_v42  ;;  %514 = vmatpush.msrb.mxu2 %v2042_v41 }
  0x6c   : > { %475 = vmatpush.msrb.mxu0 %v2048_v43  ;;  %495 = vmatpush.msrb.mxu1 %v2050_v44 }
  0x6d   : > { %534 = vmatpush.msrb.mxu3 %v2056_v46  ;;  %515 = vmatpush.msrb.mxu2 %v2054_v45 }
  0x6e   : > { %476 = vmatpush.msrb.mxu0 %v2060_v47  ;;  %496 = vmatpush.msrb.mxu1 %v2062_v48 }
  0x6f   : > { %535 = vmatpush.msrb.mxu3 %v2068_v50  ;;  %516 = vmatpush.msrb.mxu2 %v2066_v49 }
  0x70   : > { %477 = vmatpush.msrb.mxu0 %v2072_v51  ;;  %497 = vmatpush.msrb.mxu1 %v2074_v52 }
  0x71   : > { %536 = vmatpush.msrb.mxu3 %v2080_v54  ;;  %517 = vmatpush.msrb.mxu2 %v2078_v53 }
  0x72   : > { %478 = vmatpush.msrb.mxu0 %v2962_v63  ;;  %498 = vmatpush.msrb.mxu1 %v2086_v56 }
  0x73   : > { %537 = vmatpush.msrb.mxu3 %v2092_v58  ;;  %518 = vmatpush.msrb.mxu2 %v2090_v57 }
  0x74   : > { %479 = vmatpush.msrb.mxu0 %v2096_v59  ;;  %499 = vmatpush.msrb.mxu1 %v2098_v60 }
  0x75   : > { %538 = vmatpush.msrb.mxu3 %v2108_v62  ;;  %519 = vmatpush.msrb.mxu2 %v2102_v61 }
  0x76   : > { %571 = vmatpush.msra.mxu0 %v1923_v0  ;;  %591 = vmatpush.msra.mxu1 %v1925_v1 }
  0x77   : > { %539 = vmatpush.msrb.mxu3 %v2111_v55  ;;  %611 = vmatpush.msra.mxu2 %v1927_v2 }
  0x78   : > { %572 = vmatpush.msra.mxu0 %v1931_v3  ;;  %592 = vmatpush.msra.mxu1 %v1933_v4 }
  0x79   : > { %631 = vmatpush.msra.mxu3 %v1946_v9  ;;  %612 = vmatpush.msra.mxu2 %v1935_v5 }
  0x7a   : > { %573 = vmatpush.msra.mxu0 %v1938_v6  ;;  %593 = vmatpush.msra.mxu1 %v1940_v7 }
  0x7b   : > { %632 = vmatpush.msra.mxu3 %v1954_v12  ;;  %613 = vmatpush.msra.mxu2 %v1944_v8 }
  0x7c   : > { %574 = vmatpush.msra.mxu0 %v1950_v10  ;;  %594 = vmatpush.msra.mxu1 %v1952_v11 }
  0x7d   : > { %633 = vmatpush.msra.mxu3 %v1960_v14  ;;  %614 = vmatpush.msra.mxu2 %v1958_v13 }
  0x7e   : > { %575 = vmatpush.msra.mxu0 %v1964_v15  ;;  %595 = vmatpush.msra.mxu1 %v1966_v16 }
  0x7f   : > { %634 = vmatpush.msra.mxu3 %v1972_v18  ;;  %615 = vmatpush.msra.mxu2 %v1970_v17 }
  0x80   : > { %576 = vmatpush.msra.mxu0 %v1976_v19  ;;  %596 = vmatpush.msra.mxu1 %v1978_v20 }
  0x81   : > { %635 = vmatpush.msra.mxu3 %v1984_v22  ;;  %616 = vmatpush.msra.mxu2 %v1982_v21 }
  0x82   : > { %577 = vmatpush.msra.mxu0 %v1988_v23  ;;  %597 = vmatpush.msra.mxu1 %v1990_v24 }
  0x83   : > { %636 = vmatpush.msra.mxu3 %v1996_v26  ;;  %617 = vmatpush.msra.mxu2 %v1994_v25 }
  0x84   : > { %578 = vmatpush.msra.mxu0 %v2000_v27  ;;  %598 = vmatpush.msra.mxu1 %v2002_v28 }
  0x85   : > { %637 = vmatpush.msra.mxu3 %v2008_v30  ;;  %618 = vmatpush.msra.mxu2 %v2006_v29 }
  0x86   : > { %579 = vmatpush.msra.mxu0 %v2012_v31  ;;  %599 = vmatpush.msra.mxu1 %v2014_v32 }
  0x87   : > { %638 = vmatpush.msra.mxu3 %v2020_v34  ;;  %619 = vmatpush.msra.mxu2 %v2018_v33 }
  0x88   : > { %580 = vmatpush.msra.mxu0 %v2024_v35  ;;  %600 = vmatpush.msra.mxu1 %v2026_v36 }
  0x89   : > { %639 = vmatpush.msra.mxu3 %v2032_v38  ;;  %620 = vmatpush.msra.mxu2 %v2030_v37 }
  0x8a   : > { %581 = vmatpush.msra.mxu0 %v2036_v39  ;;  %601 = vmatpush.msra.mxu1 %v2038_v40 }
  0x8b   : > { %640 = vmatpush.msra.mxu3 %v2044_v42  ;;  %621 = vmatpush.msra.mxu2 %v2042_v41 }
  0x8c   : > { %582 = vmatpush.msra.mxu0 %v2048_v43  ;;  %602 = vmatpush.msra.mxu1 %v2050_v44 }
  0x8d   : > { %641 = vmatpush.msra.mxu3 %v2056_v46  ;;  %622 = vmatpush.msra.mxu2 %v2054_v45 }
  0x8e   : > { %583 = vmatpush.msra.mxu0 %v2060_v47  ;;  %603 = vmatpush.msra.mxu1 %v2062_v48  ;;  %v356_v48 = vld [vmem:[%s1913_s20 + $0x18] sm:$0xff] }
  0x8f   : > { %642 = vmatpush.msra.mxu3 %v2068_v50  ;;  %623 = vmatpush.msra.mxu2 %v2066_v49 }
  0x90   : > { %584 = vmatpush.msra.mxu0 %v2072_v51  ;;  %604 = vmatpush.msra.mxu1 %v2074_v52 }
  0x91   : > { %643 = vmatpush.msra.mxu3 %v2080_v54  ;;  %624 = vmatpush.msra.mxu2 %v2078_v53  ;;  %v353_v53 = vld [vmem:[%s1913_s20] sm:$0xff] }
  0x92   : > { %585 = vmatpush.msra.mxu0 %v2962_v63  ;;  %605 = vmatpush.msra.mxu1 %v2086_v56 }
  0x93   : > { %644 = vmatpush.msra.mxu3 %v2092_v58  ;;  %625 = vmatpush.msra.mxu2 %v2090_v57  ;;  %v354_v58 = vld [vmem:[%s1913_s20 + $0x8] sm:$0xff]  ;;  %v355_v57 = vld [vmem:[%s1913_s20 + $0x10] sm:$0xff] }
  0x94   : > { %586 = vmatpush.msra.mxu0 %v2096_v59  ;;  %606 = vmatpush.msra.mxu1 %v2098_v60 }
  0x95   : > { %645 = vmatpush.msra.mxu3 %v2108_v62  ;;  %626 = vmatpush.msra.mxu2 %v2102_v61 }
  0x97   : > { %646 = vmatpush.msra.mxu3 %v2111_v55 }
  0xd0   : > { %v374_v52 = vpop.f32.mrf.mxu0 }
  0xd1   : > { %v437_v63 = vadd.f32 %v374_v52, %v353_v53  ;;  %v394_v51 = vpop.f32.mrf.mxu1 }
  0xd2   : > { %v438_v56 = vadd.f32 %v394_v51, %v354_v58 }
  0xd3   : > { %v441_v54 = vmul.f32 0.5, %v437_v63  ;;  %v2972_v63 = vld [vmem:[#allocation20_spill] sm:$0xff] }
  0xd4   : > { %v445_v49 = vmul.f32 0.5, %v438_v56 }
  0xd5   : > { %1491 = vtanh.f32 %v441_v54 }
  0xd6   : > { %1493 = vtanh.f32 %v445_v49 }
  0xd7   : > { %v414_v62 = vpop.f32.mrf.mxu2 }
  0xd8   : > { %v439_v59 = vadd.f32 %v414_v62, %v355_v57 }
  0xda   : > { %1495 = vtanh.f32 %v439_v59 }
  0xdb   : > { %v1492_v60 = vpop.eup %1491  ;;  %v434_v47 = vpop.f32.mrf.mxu3 }
  0xdc   : > { %v1494_v61 = vpop.eup %1493  ;;  %v443_v50 = vmul.f32 0.5, %v1492_v60  ;;  %v440_v55 = vadd.f32 %v434_v47, %v356_v48  ;;  %v2966_v47 = vld [vmem:[#allocation18_spill] sm:$0xff]  ;;  %v2967_v48 = vld [vmem:[#allocation15_spill] sm:$0xff] }
  0xdd   : > { %v447_v45 = vmul.f32 0.5, %v1494_v61  ;;  %v2970_v60 = vld [vmem:[#allocation22_spill] sm:$0xff]  ;;  %v2971_v61 = vld [vmem:[#allocation19_spill] sm:$0xff] }
  0xde   : > { %v444_v44 = vadd.f32 0.5, %v443_v50  ;;  %v450_v43 = vmul.f32 0.5, %v440_v55  ;;  %v2968_v50 = vld [vmem:[#allocation16_spill] sm:$0xff]  ;;  %v2969_v55 = vld [vmem:[#allocation17_spill] sm:$0xff] }
  0xdf   : > { %v448_v52 = vadd.f32 0.5, %v447_v45  ;;  %v2965_v45 = vld [vmem:[#allocation13_spill] sm:$0xff] }
  0xe0   : > { %v1496_v53 = vpop.eup %1495  ;;  %1497 = vtanh.f32 %v450_v43  ;;  %v2963_v43 = vld [vmem:[#allocation11_spill] sm:$0xff] }
  0xe1   : > { %v454_v51 = vmul.f32 0.0, %v448_v52  ;;  %v455_v56 = vmul.f32 %v1496_v53, %v444_v44  ;;  %v2964_v44 = vld [vmem:[#allocation12_spill] sm:$0xff]  ;;  %v2973_v52 = vld [vmem:[#allocation21_spill] sm:$0xff]  ;;  %v2974_v53 = vld [vmem:[#allocation26_spill] sm:$0xff] }
  0xe3   : > { %v2247_v54 = vadd.f32 %v455_v56, %v454_v51  ;;  %v2975_v51 = vld [vmem:[#allocation23_spill] sm:$0xff]  ;;  %v2976_v56 = vld [vmem:[#allocation24_spill] sm:$0xff] }
  0xe5   : > { %1499 = vtanh.f32 %v2247_v54 }
  0xe6   : > { %v1498_v49 = vpop.eup %1497 }
  0xe7   : > { %v452_v57 = vmul.f32 0.5, %v1498_v49  ;;  %v2977_v49 = vld [vmem:[#allocation25_spill] sm:$0xff] }
  0xe9   : > { %v453_v58 = vadd.f32 0.5, %v452_v57  ;;  %v2978_v57 = vld [vmem:[#allocation30_spill] sm:$0xff] }
  0xeb   : > { %v1500_v59 = vpop.eup %1499 }
  0xec   : > { %v458_v62 = vmul.f32 %v1500_v59, %v453_v58  ;;  %v2979_v58 = vld [vmem:[#allocation27_spill] sm:$0xff]  ;;  %v2980_v59 = vld [vmem:[#allocation28_spill] sm:$0xff] }
  0xee   : > { %480 = vmatmul.f32.vlgmr.msrb.gmra.mxu0 %v458_v62  ;;  %500 = vmatmul.f32.vlgmr.msrb.gmra.mxu1 %v458_v62 }
  0xef   : > { %520 = vmatmul.f32.vlgmr.msrb.gmra.mxu2 %v458_v62  ;;  %540 = vmatmul.f32.vlgmr.msrb.gmra.mxu3 %v458_v62  ;;  %v2981_v62 = vld [vmem:[#allocation29_spill] sm:$0xff] }
  0xf0   : > { %678 = vmatpush.msrb.mxu0 %v1923_v0  ;;  %698 = vmatpush.msrb.mxu1 %v1925_v1 }
  0xf1   : > { %718 = vmatpush.msrb.mxu2 %v1927_v2  ;;  %738 = vmatpush.msrb.mxu3 %v1946_v9 }
  0xf2   : > { %679 = vmatpush.msrb.mxu0 %v1931_v3  ;;  %699 = vmatpush.msrb.mxu1 %v1933_v4 }
  0xf3   : > { %719 = vmatpush.msrb.mxu2 %v1935_v5  ;;  %739 = vmatpush.msrb.mxu3 %v1954_v12 }
  0xf4   : > { %680 = vmatpush.msrb.mxu0 %v1938_v6  ;;  %700 = vmatpush.msrb.mxu1 %v1940_v7 }
  0xf5   : > { %720 = vmatpush.msrb.mxu2 %v1944_v8  ;;  %740 = vmatpush.msrb.mxu3 %v1960_v14 }
  0xf6   : > { %681 = vmatpush.msrb.mxu0 %v1950_v10  ;;  %701 = vmatpush.msrb.mxu1 %v1952_v11 }
  0xf7   : > { %721 = vmatpush.msrb.mxu2 %v1958_v13  ;;  %741 = vmatpush.msrb.mxu3 %v1972_v18 }
  0xf8   : > { %682 = vmatpush.msrb.mxu0 %v1964_v15  ;;  %702 = vmatpush.msrb.mxu1 %v1966_v16 }
  0xf9   : > { %722 = vmatpush.msrb.mxu2 %v1970_v17  ;;  %742 = vmatpush.msrb.mxu3 %v1984_v22 }
  0xfa   : > { %683 = vmatpush.msrb.mxu0 %v1976_v19  ;;  %703 = vmatpush.msrb.mxu1 %v1978_v20 }
  0xfb   : > { %723 = vmatpush.msrb.mxu2 %v1982_v21  ;;  %743 = vmatpush.msrb.mxu3 %v1996_v26 }
  0xfc   : > { %684 = vmatpush.msrb.mxu0 %v1988_v23  ;;  %704 = vmatpush.msrb.mxu1 %v1990_v24 }
  0xfd   : > { %724 = vmatpush.msrb.mxu2 %v1994_v25  ;;  %744 = vmatpush.msrb.mxu3 %v2008_v30 }
  0xfe   : > { %685 = vmatpush.msrb.mxu0 %v2000_v27  ;;  %705 = vmatpush.msrb.mxu1 %v2002_v28 }
  0xff   : > { %725 = vmatpush.msrb.mxu2 %v2006_v29  ;;  %745 = vmatpush.msrb.mxu3 %v2020_v34 }
 0x100   : > { %686 = vmatpush.msrb.mxu0 %v2012_v31  ;;  %706 = vmatpush.msrb.mxu1 %v2014_v32 }
 0x101   : > { %726 = vmatpush.msrb.mxu2 %v2018_v33  ;;  %746 = vmatpush.msrb.mxu3 %v2032_v38 }
 0x102   : > { %687 = vmatpush.msrb.mxu0 %v2024_v35  ;;  %707 = vmatpush.msrb.mxu1 %v2026_v36 }
 0x103   : > { %727 = vmatpush.msrb.mxu2 %v2030_v37  ;;  %747 = vmatpush.msrb.mxu3 %v2044_v42 }
 0x104   : > { %688 = vmatpush.msrb.mxu0 %v2036_v39  ;;  %708 = vmatpush.msrb.mxu1 %v2038_v40 }
 0x105   : > { %728 = vmatpush.msrb.mxu2 %v2042_v41  ;;  %748 = vmatpush.msrb.mxu3 %v2056_v46 }
 0x106   : > { %689 = vmatpush.msrb.mxu0 %v2963_v43  ;;  %709 = vmatpush.msrb.mxu1 %v2964_v44 }
 0x107   : > { %729 = vmatpush.msrb.mxu2 %v2965_v45  ;;  %749 = vmatpush.msrb.mxu3 %v2966_v47 }
 0x108   : > { %690 = vmatpush.msrb.mxu0 %v2967_v48  ;;  %710 = vmatpush.msrb.mxu1 %v2968_v50  ;;  %v1397_v48 = vld [vmem:[%s1913_s20 + $0x38] sm:$0xff] }
 0x109   : > { %730 = vmatpush.msrb.mxu2 %v2969_v55  ;;  %750 = vmatpush.msrb.mxu3 %v2970_v60 }
 0x10a   : > { %691 = vmatpush.msrb.mxu0 %v2971_v61  ;;  %711 = vmatpush.msrb.mxu1 %v2972_v63  ;;  %v2982_v63 = vld [vmem:[#allocation31_spill] sm:$0xff] }
 0x10b   : > { %731 = vmatpush.msrb.mxu2 %v2973_v52  ;;  %751 = vmatpush.msrb.mxu3 %v2974_v53  ;;  %v1394_v52 = vld [vmem:[%s1913_s20 + $0x20] sm:$0xff]  ;;  %v1395_v53 = vld [vmem:[%s1913_s20 + $0x28] sm:$0xff] }
 0x10c   : > { %692 = vmatpush.msrb.mxu0 %v2975_v51  ;;  %712 = vmatpush.msrb.mxu1 %v2976_v56 }
 0x10d   : > { %732 = vmatpush.msrb.mxu2 %v2977_v49  ;;  %752 = vmatpush.msrb.mxu3 %v2978_v57  ;;  %v1396_v49 = vld [vmem:[%s1913_s20 + $0x30] sm:$0xff] }
 0x10e   : > { %693 = vmatpush.msrb.mxu0 %v2979_v58  ;;  %713 = vmatpush.msrb.mxu1 %v2980_v59 }
 0x10f   : > { %733 = vmatpush.msrb.mxu2 %v2981_v62  ;;  %753 = vmatpush.msrb.mxu3 %v2982_v63 }
 0x16b   : > { %v481_v61 = vpop.f32.mrf.mxu0  ;;  %v501_v51 = vpop.f32.mrf.mxu1 }
 0x16c   : > { %v544_v60 = vadd.f32 %v1394_v52, %v481_v61  ;;  %v545_v56 = vadd.f32 %v1395_v53, %v501_v51 }
 0x16e   : > { %v548_v55 = vmul.f32 0.5, %v544_v60  ;;  %v552_v50 = vmul.f32 0.5, %v545_v56 }
 0x170   : > { %1501 = vtanh.f32 %v548_v55 }
 0x171   : > { %1503 = vtanh.f32 %v552_v50 }
 0x172   : > { %v521_v57 = vpop.f32.mrf.mxu2  ;;  %v541_v58 = vpop.f32.mrf.mxu3 }
 0x173   : > { %v546_v47 = vadd.f32 %v1396_v49, %v521_v57  ;;  %v547_v59 = vadd.f32 %v1397_v48, %v541_v58  ;;  %v2989_v49 = vld [vmem:[#allocation16_spill] sm:$0xff]  ;;  %v2990_v57 = vld [vmem:[#allocation17_spill] sm:$0xff]  ;;  %v2991_v58 = vld [vmem:[#allocation22_spill] sm:$0xff] }
 0x175   : > { %1505 = vtanh.f32 %v546_v47  ;;  %v557_v62 = vmul.f32 0.5, %v547_v59  ;;  %v2992_v59 = vld [vmem:[#allocation19_spill] sm:$0xff] }
 0x176   : > { %v1502_v45 = vpop.eup %1501 }
 0x177   : > { %v1504_v63 = vpop.eup %1503  ;;  %v550_v44 = vmul.f32 0.5, %v1502_v45  ;;  %1507 = vtanh.f32 %v557_v62  ;;  %v2987_v45 = vld [vmem:[#allocation18_spill] sm:$0xff]  ;;  %v2993_v62 = vld [vmem:[#allocation20_spill] sm:$0xff] }
 0x178   : > { %v554_v43 = vmul.f32 0.5, %v1504_v63  ;;  %v2988_v63 = vld [vmem:[#allocation15_spill] sm:$0xff] }
 0x179   : > { %v551_v46 = vadd.f32 0.5, %v550_v44  ;;  %v2986_v44 = vld [vmem:[#allocation13_spill] sm:$0xff] }
 0x17a   : > { %v555_v61 = vadd.f32 0.5, %v554_v43  ;;  %v2985_v43 = vld [vmem:[#allocation12_spill] sm:$0xff] }
 0x17b   : > { %v1506_v52 = vpop.eup %1505 }
 0x17c   : > { %v561_v60 = vmul.f32 %v555_v61, %v2247_v54  ;;  %v562_v55 = vmul.f32 %v1506_v52, %v551_v46  ;;  %v2983_v46 = vld [vmem:[#allocation14_spill] sm:$0xff]  ;;  %v2984_v54 = vld [vmem:[#allocation11_spill] sm:$0xff]  ;;  %v2994_v61 = vld [vmem:[#allocation21_spill] sm:$0xff] }
 0x17d   : > { %v1508_v53 = vpop.eup %1507  ;;  %v2995_v52 = vld [vmem:[#allocation26_spill] sm:$0xff] }
 0x17e   : > { %v2319_v51 = vadd.f32 %v562_v55, %v561_v60  ;;  %v559_v50 = vmul.f32 0.5, %v1508_v53  ;;  %v2996_v60 = vld [vmem:[#allocation23_spill] sm:$0xff]  ;;  %v2997_v55 = vld [vmem:[#allocation24_spill] sm:$0xff]  ;;  %v2998_v53 = vld [vmem:[#allocation25_spill] sm:$0xff] }
 0x180   : > { %1509 = vtanh.f32 %v2319_v51  ;;  %v560_v48 = vadd.f32 0.5, %v559_v50  ;;  %v2999_v50 = vld [vmem:[#allocation30_spill] sm:$0xff] }
 0x186   : > { %v1510_v47 = vpop.eup %1509 }
 0x187   : > { %v565_v56 = vmul.f32 %v1510_v47, %v560_v48  ;;  %v3000_v48 = vld [vmem:[#allocation27_spill] sm:$0xff]  ;;  %v3001_v47 = vld [vmem:[#allocation28_spill] sm:$0xff] }
 0x189   : > { %587 = vmatmul.f32.vlgmr.msra.gmra.mxu0 %v565_v56  ;;  %607 = vmatmul.f32.vlgmr.msra.gmra.mxu1 %v565_v56 }
 0x18a   : > { %627 = vmatmul.f32.vlgmr.msra.gmra.mxu2 %v565_v56  ;;  %647 = vmatmul.f32.vlgmr.msra.gmra.mxu3 %v565_v56  ;;  %v3002_v56 = vld [vmem:[#allocation29_spill] sm:$0xff] }
 0x18b   : > { %785 = vmatpush.msra.mxu0 %v1923_v0  ;;  %805 = vmatpush.msra.mxu1 %v1925_v1 }
 0x18c   : > { %825 = vmatpush.msra.mxu2 %v1927_v2  ;;  %845 = vmatpush.msra.mxu3 %v1946_v9 }
 0x18d   : > { %786 = vmatpush.msra.mxu0 %v1931_v3  ;;  %806 = vmatpush.msra.mxu1 %v1933_v4 }
 0x18e   : > { %826 = vmatpush.msra.mxu2 %v1935_v5  ;;  %846 = vmatpush.msra.mxu3 %v1954_v12 }
 0x18f   : > { %787 = vmatpush.msra.mxu0 %v1938_v6  ;;  %807 = vmatpush.msra.mxu1 %v1940_v7 }
 0x190   : > { %827 = vmatpush.msra.mxu2 %v1944_v8  ;;  %847 = vmatpush.msra.mxu3 %v1960_v14 }
 0x191   : > { %788 = vmatpush.msra.mxu0 %v1950_v10  ;;  %808 = vmatpush.msra.mxu1 %v1952_v11 }
 0x192   : > { %828 = vmatpush.msra.mxu2 %v1958_v13  ;;  %848 = vmatpush.msra.mxu3 %v1972_v18 }
 0x193   : > { %789 = vmatpush.msra.mxu0 %v1964_v15  ;;  %809 = vmatpush.msra.mxu1 %v1966_v16 }
 0x194   : > { %829 = vmatpush.msra.mxu2 %v1970_v17  ;;  %849 = vmatpush.msra.mxu3 %v1984_v22 }
 0x195   : > { %790 = vmatpush.msra.mxu0 %v1976_v19  ;;  %810 = vmatpush.msra.mxu1 %v1978_v20 }
 0x196   : > { %830 = vmatpush.msra.mxu2 %v1982_v21  ;;  %850 = vmatpush.msra.mxu3 %v1996_v26 }
 0x197   : > { %791 = vmatpush.msra.mxu0 %v1988_v23  ;;  %811 = vmatpush.msra.mxu1 %v1990_v24 }
 0x198   : > { %831 = vmatpush.msra.mxu2 %v1994_v25  ;;  %851 = vmatpush.msra.mxu3 %v2008_v30 }
 0x199   : > { %792 = vmatpush.msra.mxu0 %v2000_v27  ;;  %812 = vmatpush.msra.mxu1 %v2002_v28 }
 0x19a   : > { %832 = vmatpush.msra.mxu2 %v2006_v29  ;;  %852 = vmatpush.msra.mxu3 %v2020_v34 }
 0x19b   : > { %793 = vmatpush.msra.mxu0 %v2012_v31  ;;  %813 = vmatpush.msra.mxu1 %v2014_v32 }
 0x19c   : > { %833 = vmatpush.msra.mxu2 %v2018_v33  ;;  %853 = vmatpush.msra.mxu3 %v2032_v38 }
 0x19d   : > { %794 = vmatpush.msra.mxu0 %v2024_v35  ;;  %814 = vmatpush.msra.mxu1 %v2026_v36 }
 0x19e   : > { %834 = vmatpush.msra.mxu2 %v2030_v37  ;;  %854 = vmatpush.msra.mxu3 %v2044_v42 }
 0x19f   : > { %795 = vmatpush.msra.mxu0 %v2036_v39  ;;  %815 = vmatpush.msra.mxu1 %v2038_v40 }
 0x1a0   : > { %835 = vmatpush.msra.mxu2 %v2042_v41  ;;  %855 = vmatpush.msra.mxu3 %v2983_v46 }
 0x1a1   : > { %796 = vmatpush.msra.mxu0 %v2984_v54  ;;  %816 = vmatpush.msra.mxu1 %v2985_v43 }
 0x1a2   : > { %836 = vmatpush.msra.mxu2 %v2986_v44  ;;  %856 = vmatpush.msra.mxu3 %v2987_v45 }
 0x1a3   : > { %797 = vmatpush.msra.mxu0 %v2988_v63  ;;  %817 = vmatpush.msra.mxu1 %v2989_v49  ;;  %v1401_v63 = vld [vmem:[%s1913_s20 + $0x58] sm:$0xff] }
 0x1a4   : > { %837 = vmatpush.msra.mxu2 %v2990_v57  ;;  %857 = vmatpush.msra.mxu3 %v2991_v58 }
 0x1a5   : > { %798 = vmatpush.msra.mxu0 %v2992_v59  ;;  %818 = vmatpush.msra.mxu1 %v2993_v62  ;;  %v3003_v62 = vld [vmem:[#allocation31_spill] sm:$0xff] }
 0x1a6   : > { %838 = vmatpush.msra.mxu2 %v2994_v61  ;;  %858 = vmatpush.msra.mxu3 %v2995_v52  ;;  %v1398_v61 = vld [vmem:[%s1913_s20 + $0x40] sm:$0xff]  ;;  %v1399_v52 = vld [vmem:[%s1913_s20 + $0x48] sm:$0xff] }
 0x1a7   : > { %799 = vmatpush.msra.mxu0 %v2996_v60  ;;  %819 = vmatpush.msra.mxu1 %v2997_v55 }
 0x1a8   : > { %839 = vmatpush.msra.mxu2 %v2998_v53  ;;  %859 = vmatpush.msra.mxu3 %v2999_v50  ;;  %v1400_v53 = vld [vmem:[%s1913_s20 + $0x50] sm:$0xff] }
 0x1a9   : > { %800 = vmatpush.msra.mxu0 %v3000_v48  ;;  %820 = vmatpush.msra.mxu1 %v3001_v47 }
 0x1aa   : > { %840 = vmatpush.msra.mxu2 %v3002_v56  ;;  %860 = vmatpush.msra.mxu3 %v3003_v62 }
 0x206   : > { %v588_v59 = vpop.f32.mrf.mxu0  ;;  %v608_v60 = vpop.f32.mrf.mxu1 }
 0x207   : > { %v651_v58 = vadd.f32 %v1398_v61, %v588_v59  ;;  %v652_v55 = vadd.f32 %v1399_v52, %v608_v60 }
 0x209   : > { %v655_v57 = vmul.f32 0.5, %v651_v58  ;;  %v659_v49 = vmul.f32 0.5, %v652_v55 }
 0x20b   : > { %1511 = vtanh.f32 %v655_v57 }
 0x20c   : > { %1513 = vtanh.f32 %v659_v49 }
 0x20d   : > { %v628_v50 = vpop.f32.mrf.mxu2  ;;  %v648_v48 = vpop.f32.mrf.mxu3 }
 0x20e   : > { %v653_v45 = vadd.f32 %v1400_v53, %v628_v50  ;;  %v654_v47 = vadd.f32 %v1401_v63, %v648_v48  ;;  %v2466_v48 = vld [vmem:[#allocation5 + $0x1e0] sm:$0xff] }
 0x210   : > { %1515 = vtanh.f32 %v653_v45  ;;  %v664_v56 = vmul.f32 0.5, %v654_v47  ;;  %v2469_v47 = vld [vmem:[#allocation5 + $0x1e8] sm:$0xff] }
 0x211   : > { %v1512_v44 = vpop.eup %1511 }
 0x212   : > { %v1514_v62 = vpop.eup %1513  ;;  %v657_v43 = vmul.f32 0.5, %v1512_v44  ;;  %1517 = vtanh.f32 %v664_v56  ;;  %v2472_v56 = vld [vmem:[#allocation5 + $0x1f0] sm:$0xff] }
 0x213   : > { %v661_v54 = vmul.f32 0.5, %v1514_v62 }
 0x214   : > { %v658_v46 = vadd.f32 0.5, %v657_v43 }
 0x215   : > { %v662_v59 = vadd.f32 0.5, %v661_v54 }
 0x216   : > { %v1516_v61 = vpop.eup %1515 }
 0x217   : > { %v668_v58 = vmul.f32 %v662_v59, %v2319_v51  ;;  %v669_v57 = vmul.f32 %v1516_v61, %v658_v46  ;;  %v2475_v59 = vld [vmem:[#allocation5 + $0x1f8] sm:$0xff]  ;;  %v2478_v61 = vld [vmem:[#allocation5 + $0x1c0] sm:$0xff] }
 0x218   : > { %v1518_v52 = vpop.eup %1517 }
 0x219   : > { %v2391_v60 = vadd.f32 %v669_v57, %v668_v58  ;;  %v666_v49 = vmul.f32 0.5, %v1518_v52  ;;  %v2481_v58 = vld [vmem:[#allocation5 + $0x1c8] sm:$0xff]  ;;  %v2484_v57 = vld [vmem:[#allocation5 + $0x1d0] sm:$0xff]  ;;  %v2487_v52 = vld [vmem:[#allocation5 + $0x1d8] sm:$0xff] }
 0x21b   : > { %1519 = vtanh.f32 %v2391_v60  ;;  %v667_v63 = vadd.f32 0.5, %v666_v49  ;;  %v2493_v49 = vld [vmem:[#allocation5 + $0x1a8] sm:$0xff] }
 0x221   : > { %v1520_v45 = vpop.eup %1519 }
 0x222   : > { %v672_v55 = vmul.f32 %v1520_v45, %v667_v63  ;;  %v2496_v63 = vld [vmem:[#allocation5 + $0x1b0] sm:$0xff]  ;;  %v2499_v45 = vld [vmem:[#allocation5 + $0x1b8] sm:$0xff] }
 0x224   : > { %694 = vmatmul.f32.vlgmr.msrb.gmra.mxu0 %v672_v55  ;;  %714 = vmatmul.f32.vlgmr.msrb.gmra.mxu1 %v672_v55 }
 0x225   : > { %734 = vmatmul.f32.vlgmr.msrb.gmra.mxu2 %v672_v55  ;;  %754 = vmatmul.f32.vlgmr.msrb.gmra.mxu3 %v672_v55  ;;  %v2502_v55 = vld [vmem:[#allocation5 + $0x180] sm:$0xff] }
 0x226   : > { %892 = vmatpush.msrb.mxu0 %v1923_v0  ;;  %912 = vmatpush.msrb.mxu1 %v1925_v1  ;;  %v3004_v0 = vld [vmem:[#allocation14_spill] sm:$0xff]  ;;  %v3005_v1 = vld [vmem:[#allocation11_spill] sm:$0xff] }
 0x227   : > { %932 = vmatpush.msrb.mxu2 %v1927_v2  ;;  %952 = vmatpush.msrb.mxu3 %v1946_v9  ;;  %v3006_v2 = vld [vmem:[#allocation12_spill] sm:$0xff]  ;;  %v3013_v9 = vld [vmem:[#allocation19_spill] sm:$0xff] }
 0x228   : > { %893 = vmatpush.msrb.mxu0 %v1931_v3  ;;  %913 = vmatpush.msrb.mxu1 %v1933_v4  ;;  %v3007_v3 = vld [vmem:[#allocation13_spill] sm:$0xff]  ;;  %v3008_v4 = vld [vmem:[#allocation18_spill] sm:$0xff] }
 0x229   : > { %933 = vmatpush.msrb.mxu2 %v1935_v5  ;;  %953 = vmatpush.msrb.mxu3 %v1954_v12  ;;  %v3009_v5 = vld [vmem:[#allocation15_spill] sm:$0xff]  ;;  %v3016_v12 = vld [vmem:[#allocation26_spill] sm:$0xff] }
 0x22a   : > { %894 = vmatpush.msrb.mxu0 %v1938_v6  ;;  %914 = vmatpush.msrb.mxu1 %v1940_v7  ;;  %v3010_v6 = vld [vmem:[#allocation16_spill] sm:$0xff]  ;;  %v3011_v7 = vld [vmem:[#allocation17_spill] sm:$0xff] }
 0x22b   : > { %934 = vmatpush.msrb.mxu2 %v1944_v8  ;;  %954 = vmatpush.msrb.mxu3 %v1960_v14  ;;  %v3012_v8 = vld [vmem:[#allocation22_spill] sm:$0xff]  ;;  %v3018_v14 = vld [vmem:[#allocation24_spill] sm:$0xff] }
 0x22c   : > { %895 = vmatpush.msrb.mxu0 %v1950_v10  ;;  %915 = vmatpush.msrb.mxu1 %v1952_v11  ;;  %v3014_v10 = vld [vmem:[#allocation20_spill] sm:$0xff]  ;;  %v3015_v11 = vld [vmem:[#allocation21_spill] sm:$0xff] }
 0x22d   : > { %935 = vmatpush.msrb.mxu2 %v1958_v13  ;;  %955 = vmatpush.msrb.mxu3 %v1972_v18  ;;  %v3017_v13 = vld [vmem:[#allocation23_spill] sm:$0xff]  ;;  %v3022_v18 = vld [vmem:[#allocation28_spill] sm:$0xff] }
 0x22e   : > { %896 = vmatpush.msrb.mxu0 %v1964_v15  ;;  %916 = vmatpush.msrb.mxu1 %v1966_v16  ;;  %v3019_v15 = vld [vmem:[#allocation25_spill] sm:$0xff]  ;;  %v3020_v16 = vld [vmem:[#allocation30_spill] sm:$0xff] }
 0x22f   : > { %936 = vmatpush.msrb.mxu2 %v1970_v17  ;;  %956 = vmatpush.msrb.mxu3 %v1984_v22  ;;  %v3021_v17 = vld [vmem:[#allocation27_spill] sm:$0xff]  ;;  %v1403_v22 = vld [vmem:[%s1913_s20 + $0x68] sm:$0xff] }
 0x230   : > { %897 = vmatpush.msrb.mxu0 %v1976_v19  ;;  %917 = vmatpush.msrb.mxu1 %v1978_v20  ;;  %v3023_v19 = vld [vmem:[#allocation29_spill] sm:$0xff]  ;;  %v3024_v20 = vld [vmem:[#allocation31_spill] sm:$0xff] }
 0x231   : > { %937 = vmatpush.msrb.mxu2 %v1982_v21  ;;  %957 = vmatpush.msrb.mxu3 %v1996_v26  ;;  %v1402_v21 = vld [vmem:[%s1913_s20 + $0x60] sm:$0xff] }
 0x232   : > { %898 = vmatpush.msrb.mxu0 %v1988_v23  ;;  %918 = vmatpush.msrb.mxu1 %v1990_v24 }
 0x233   : > { %938 = vmatpush.msrb.mxu2 %v1994_v25  ;;  %958 = vmatpush.msrb.mxu3 %v2008_v30  ;;  %v1405_v30 = vld [vmem:[%s1913_s20 + $0x78] sm:$0xff] }
 0x234   : > { %899 = vmatpush.msrb.mxu0 %v2000_v27  ;;  %919 = vmatpush.msrb.mxu1 %v2002_v28 }
 0x235   : > { %939 = vmatpush.msrb.mxu2 %v2006_v29  ;;  %959 = vmatpush.msrb.mxu3 %v2020_v34  ;;  %v1404_v29 = vld [vmem:[%s1913_s20 + $0x70] sm:$0xff] }
 0x236   : > { %900 = vmatpush.msrb.mxu0 %v2012_v31  ;;  %920 = vmatpush.msrb.mxu1 %v2014_v32 }
 0x237   : > { %940 = vmatpush.msrb.mxu2 %v2018_v33  ;;  %960 = vmatpush.msrb.mxu3 %v2032_v38 }
 0x238   : > { %901 = vmatpush.msrb.mxu0 %v2024_v35  ;;  %921 = vmatpush.msrb.mxu1 %v2026_v36 }
 0x239   : > { %941 = vmatpush.msrb.mxu2 %v2030_v37  ;;  %961 = vmatpush.msrb.mxu3 %v2044_v42 }
 0x23a   : > { %902 = vmatpush.msrb.mxu0 %v2036_v39  ;;  %922 = vmatpush.msrb.mxu1 %v2038_v40 }
 0x23b   : > { %942 = vmatpush.msrb.mxu2 %v2042_v41  ;;  %962 = vmatpush.msrb.mxu3 %v3004_v0  ;;  %v2505_v0 = vld [vmem:[#allocation5 + $0x188] sm:$0xff] }
 0x23c   : > { %903 = vmatpush.msrb.mxu0 %v3005_v1  ;;  %923 = vmatpush.msrb.mxu1 %v3006_v2  ;;  %v2508_v1 = vld [vmem:[#allocation5 + $0x190] sm:$0xff]  ;;  %v2511_v2 = vld [vmem:[#allocation5 + $0x198] sm:$0xff] }
 0x23d   : > { %943 = vmatpush.msrb.mxu2 %v3007_v3  ;;  %963 = vmatpush.msrb.mxu3 %v3008_v4  ;;  %v2514_v3 = vld [vmem:[#allocation5 + $0x160] sm:$0xff]  ;;  %v2517_v4 = vld [vmem:[#allocation5 + $0x168] sm:$0xff] }
 0x23e   : > { %904 = vmatpush.msrb.mxu0 %v3009_v5  ;;  %924 = vmatpush.msrb.mxu1 %v3010_v6  ;;  %v2520_v5 = vld [vmem:[#allocation5 + $0x170] sm:$0xff]  ;;  %v2523_v6 = vld [vmem:[#allocation5 + $0x178] sm:$0xff] }
 0x23f   : > { %944 = vmatpush.msrb.mxu2 %v3011_v7  ;;  %964 = vmatpush.msrb.mxu3 %v3012_v8  ;;  %v2526_v7 = vld [vmem:[#allocation5 + $0x140] sm:$0xff]  ;;  %v2529_v8 = vld [vmem:[#allocation5 + $0x148] sm:$0xff] }
 0x240   : > { %905 = vmatpush.msrb.mxu0 %v3013_v9  ;;  %925 = vmatpush.msrb.mxu1 %v3014_v10  ;;  %v2532_v9 = vld [vmem:[#allocation5 + $0x150] sm:$0xff]  ;;  %v2535_v10 = vld [vmem:[#allocation5 + $0x158] sm:$0xff] }
 0x241   : > { %945 = vmatpush.msrb.mxu2 %v3015_v11  ;;  %965 = vmatpush.msrb.mxu3 %v3016_v12  ;;  %v2538_v11 = vld [vmem:[#allocation5 + $0x120] sm:$0xff]  ;;  %v2541_v12 = vld [vmem:[#allocation5 + $0x128] sm:$0xff] }
 0x242   : > { %906 = vmatpush.msrb.mxu0 %v3017_v13  ;;  %926 = vmatpush.msrb.mxu1 %v3018_v14  ;;  %v2544_v13 = vld [vmem:[#allocation5 + $0x130] sm:$0xff]  ;;  %v2547_v14 = vld [vmem:[#allocation5 + $0x138] sm:$0xff] }
 0x243   : > { %946 = vmatpush.msrb.mxu2 %v3019_v15  ;;  %966 = vmatpush.msrb.mxu3 %v3020_v16  ;;  %v2550_v15 = vld [vmem:[#allocation5 + $0x100] sm:$0xff]  ;;  %v2553_v16 = vld [vmem:[#allocation5 + $0x108] sm:$0xff] }
 0x244   : > { %907 = vmatpush.msrb.mxu0 %v3021_v17  ;;  %927 = vmatpush.msrb.mxu1 %v3022_v18  ;;  %v2556_v17 = vld [vmem:[#allocation5 + $0x110] sm:$0xff]  ;;  %v2559_v18 = vld [vmem:[#allocation5 + $0x118] sm:$0xff] }
 0x245   : > { %947 = vmatpush.msrb.mxu2 %v3023_v19  ;;  %967 = vmatpush.msrb.mxu3 %v3024_v20  ;;  %v2562_v19 = vld [vmem:[#allocation5 + $0xe0] sm:$0xff]  ;;  %v2565_v20 = vld [vmem:[#allocation5 + $0xe8] sm:$0xff] }
 0x2a1   : > { %v695_v23 = vpop.f32.mrf.mxu0  ;;  %v715_v24 = vpop.f32.mrf.mxu1 }
 0x2a2   : > { %v758_v25 = vadd.f32 %v1402_v21, %v695_v23  ;;  %v759_v26 = vadd.f32 %v1403_v22, %v715_v24  ;;  %v2568_v21 = vld [vmem:[#allocation5 + $0xf0] sm:$0xff]  ;;  %v2571_v22 = vld [vmem:[#allocation5 + $0xf8] sm:$0xff]  ;;  %v2574_v23 = vld [vmem:[#allocation5 + $0xc0] sm:$0xff] }
 0x2a3   : > { %v2577_v24 = vld [vmem:[#allocation5 + $0xc8] sm:$0xff] }
 0x2a4   : > { %v762_v27 = vmul.f32 0.5, %v758_v25  ;;  %v766_v28 = vmul.f32 0.5, %v759_v26  ;;  %v2580_v25 = vld [vmem:[#allocation5 + $0xd0] sm:$0xff]  ;;  %v2583_v26 = vld [vmem:[#allocation5 + $0xd8] sm:$0xff] }
 0x2a6   : > { %1521 = vtanh.f32 %v762_v27  ;;  %v2586_v27 = vld [vmem:[#allocation5 + $0xa0] sm:$0xff] }
 0x2a7   : > { %1523 = vtanh.f32 %v766_v28  ;;  %v2589_v28 = vld [vmem:[#allocation5 + $0xa8] sm:$0xff] }
 0x2a8   : > { %v735_v31 = vpop.f32.mrf.mxu2  ;;  %v755_v32 = vpop.f32.mrf.mxu3 }
 0x2a9   : > { %v760_v33 = vadd.f32 %v1404_v29, %v735_v31  ;;  %v761_v34 = vadd.f32 %v1405_v30, %v755_v32  ;;  %v2592_v29 = vld [vmem:[#allocation5 + $0xb0] sm:$0xff]  ;;  %v2595_v30 = vld [vmem:[#allocation5 + $0xb8] sm:$0xff]  ;;  %v2598_v31 = vld [vmem:[#allocation5 + $0x80] sm:$0xff] }
 0x2aa   : > { %3025 = vst [vmem:[#allocation14_spill] sm:$0xff] %v2595_v30  ;;  %v2601_v32 = vld [vmem:[#allocation5 + $0x88] sm:$0xff] }
 0x2ab   : > { %1525 = vtanh.f32 %v760_v33  ;;  %v771_v35 = vmul.f32 0.5, %v761_v34  ;;  %3026 = vst [vmem:[#allocation11_spill] sm:$0xff] %v2598_v31  ;;  %v2604_v33 = vld [vmem:[#allocation5 + $0x90] sm:$0xff]  ;;  %v2607_v34 = vld [vmem:[#allocation5 + $0x98] sm:$0xff] }
 0x2ac   : > { %v1522_v36 = vpop.eup %1521  ;;  %3027 = vst [vmem:[#allocation12_spill] sm:$0xff] %v2601_v32 }
 0x2ad   : > { %v1524_v37 = vpop.eup %1523  ;;  %v764_v38 = vmul.f32 0.5, %v1522_v36  ;;  %1527 = vtanh.f32 %v771_v35  ;;  %3028 = vst [vmem:[#allocation13_spill] sm:$0xff] %v2604_v33  ;;  %v2610_v35 = vld [vmem:[#allocation5 + $0x60] sm:$0xff]  ;;  %v2613_v36 = vld [vmem:[#allocation5 + $0x68] sm:$0xff] }
 0x2ae   : > { %v768_v39 = vmul.f32 0.5, %v1524_v37  ;;  %3029 = vst [vmem:[#allocation18_spill] sm:$0xff] %v2607_v34  ;;  %v2616_v37 = vld [vmem:[#allocation5 + $0x70] sm:$0xff] }
 0x2af   : > { %v765_v40 = vadd.f32 0.5, %v764_v38  ;;  %3030 = vst [vmem:[#allocation15_spill] sm:$0xff] %v2610_v35  ;;  %v2619_v38 = vld [vmem:[#allocation5 + $0x78] sm:$0xff] }
 0x2b0   : > { %v769_v41 = vadd.f32 0.5, %v768_v39  ;;  %3031 = vst [vmem:[#allocation16_spill] sm:$0xff] %v2613_v36  ;;  %v2622_v39 = vld [vmem:[#allocation5 + $0x40] sm:$0xff] }
 0x2b1   : > { %v1526_v42 = vpop.eup %1525  ;;  %3032 = vst [vmem:[#allocation17_spill] sm:$0xff] %v2616_v37 }
 0x2b2   : > { %v775_v51 = vmul.f32 %v769_v41, %v2391_v60  ;;  %v776_v46 = vmul.f32 %v1526_v42, %v765_v40  ;;  %v2490_v60 = vld [vmem:[#allocation5 + $0x1a0] sm:$0xff]  ;;  %3033 = vst [vmem:[#allocation22_spill] sm:$0xff] %v2619_v38  ;;  %v2625_v40 = vld [vmem:[#allocation5 + $0x48] sm:$0xff]  ;;  %v2628_v41 = vld [vmem:[#allocation5 + $0x50] sm:$0xff] }
 0x2b3   : > { %v1528_v54 = vpop.eup %1527  ;;  %3034 = vst [vmem:[#allocation19_spill] sm:$0xff] %v2622_v39  ;;  %v2631_v42 = vld [vmem:[#allocation5 + $0x58] sm:$0xff] }
 0x2b4   : > { %v2463_v43 = vadd.f32 %v776_v46, %v775_v51  ;;  %v773_v44 = vmul.f32 0.5, %v1528_v54  ;;  %3035 = vst [vmem:[#allocation20_spill] sm:$0xff] %v2625_v40  ;;  %v2634_v51 = vld [vmem:[#allocation5 + $0x20] sm:$0xff]  ;;  %v2637_v46 = vld [vmem:[#allocation5 + $0x28] sm:$0xff]  ;;  %v2640_v54 = vld [vmem:[#allocation5 + $0x30] sm:$0xff] }
 0x2b5   : > { %3036 = vst [vmem:[#allocation21_spill] sm:$0xff] %v2628_v41 }
 0x2b6   : > { %1529 = vtanh.f32 %v2463_v43  ;;  %v774_v62 = vadd.f32 0.5, %v773_v44  ;;  %3037 = vst [vmem:[#allocation26_spill] sm:$0xff] %v2631_v42  ;;  %v2643_v44 = vld [vmem:[#allocation5 + $0x38] sm:$0xff] }
 0x2b7   : > { %3038 = vst [vmem:[#allocation23_spill] sm:$0xff] %v2634_v51 }
 0x2b8   : > { %3039 = vst [vmem:[#allocation24_spill] sm:$0xff] %v2637_v46 }
 0x2b9   : > { %3040 = vst [vmem:[#allocation25_spill] sm:$0xff] %v2640_v54 }
 0x2ba   : > { %3041 = vst [vmem:[#allocation30_spill] sm:$0xff] %v2643_v44 }
 0x2bc   : > { %v1530_v53 = vpop.eup %1529 }
 0x2bd   : > { %v779_v50 = vmul.f32 %v1530_v53, %v774_v62  ;;  %v2646_v62 = vld [vmem:[#allocation5] sm:$0xff]  ;;  %v2649_v53 = vld [vmem:[#allocation5 + $0x8] sm:$0xff] }
 0x2be   : > { %3042 = vst [vmem:[#allocation27_spill] sm:$0xff] %v2646_v62 }
 0x2bf   : > { %801 = vmatmul.f32.vlgmr.msra.gmra.mxu0 %v779_v50  ;;  %821 = vmatmul.f32.vlgmr.msra.gmra.mxu1 %v779_v50  ;;  %3043 = vst [vmem:[#allocation28_spill] sm:$0xff] %v2649_v53 }
 0x2c0   : > { %841 = vmatmul.f32.vlgmr.msra.gmra.mxu2 %v779_v50  ;;  %861 = vmatmul.f32.vlgmr.msra.gmra.mxu3 %v779_v50  ;;  %v2652_v50 = vld [vmem:[#allocation5 + $0x10] sm:$0xff] }
 0x2c1   : > { %999 = vmatpush.msra.mxu0 %v2466_v48  ;;  %1019 = vmatpush.msra.mxu1 %v2469_v47  ;;  %3044 = vst [vmem:[#allocation29_spill] sm:$0xff] %v2652_v50 }
 0x2c2   : > { %1039 = vmatpush.msra.mxu2 %v2472_v56  ;;  %1059 = vmatpush.msra.mxu3 %v2475_v59 }
 0x2c3   : > { %1000 = vmatpush.msra.mxu0 %v2478_v61  ;;  %1020 = vmatpush.msra.mxu1 %v2481_v58 }
 0x2c4   : > { %1040 = vmatpush.msra.mxu2 %v2484_v57  ;;  %1060 = vmatpush.msra.mxu3 %v2487_v52 }
 0x2c5   : > { %1001 = vmatpush.msra.mxu0 %v2490_v60  ;;  %1021 = vmatpush.msra.mxu1 %v2493_v49 }
 0x2c6   : > { %1041 = vmatpush.msra.mxu2 %v2496_v63  ;;  %1061 = vmatpush.msra.mxu3 %v2499_v45 }
 0x2c7   : > { %1002 = vmatpush.msra.mxu0 %v2502_v55  ;;  %1022 = vmatpush.msra.mxu1 %v2505_v0 }
 0x2c8   : > { %1042 = vmatpush.msra.mxu2 %v2508_v1  ;;  %1062 = vmatpush.msra.mxu3 %v2511_v2 }
 0x2c9   : > { %1003 = vmatpush.msra.mxu0 %v2514_v3  ;;  %1023 = vmatpush.msra.mxu1 %v2517_v4 }
 0x2ca   : > { %1043 = vmatpush.msra.mxu2 %v2520_v5  ;;  %1063 = vmatpush.msra.mxu3 %v2523_v6 }
 0x2cb   : > { %1004 = vmatpush.msra.mxu0 %v2526_v7  ;;  %1024 = vmatpush.msra.mxu1 %v2529_v8 }
 0x2cc   : > { %1044 = vmatpush.msra.mxu2 %v2532_v9  ;;  %1064 = vmatpush.msra.mxu3 %v2535_v10 }
 0x2cd   : > { %1005 = vmatpush.msra.mxu0 %v2538_v11  ;;  %1025 = vmatpush.msra.mxu1 %v2541_v12 }
 0x2ce   : > { %1045 = vmatpush.msra.mxu2 %v2544_v13  ;;  %1065 = vmatpush.msra.mxu3 %v2547_v14 }
 0x2cf   : > { %1006 = vmatpush.msra.mxu0 %v2550_v15  ;;  %1026 = vmatpush.msra.mxu1 %v2553_v16 }
 0x2d0   : > { %1046 = vmatpush.msra.mxu2 %v2556_v17  ;;  %1066 = vmatpush.msra.mxu3 %v2559_v18 }
 0x2d1   : > { %1007 = vmatpush.msra.mxu0 %v2562_v19  ;;  %1027 = vmatpush.msra.mxu1 %v2565_v20 }
 0x2d2   : > { %1047 = vmatpush.msra.mxu2 %v2568_v21  ;;  %1067 = vmatpush.msra.mxu3 %v2571_v22 }
 0x2d3   : > { %1008 = vmatpush.msra.mxu0 %v2574_v23  ;;  %1028 = vmatpush.msra.mxu1 %v2577_v24 }
 0x2d4   : > { %1048 = vmatpush.msra.mxu2 %v2580_v25  ;;  %1068 = vmatpush.msra.mxu3 %v2583_v26 }
 0x2d5   : > { %1009 = vmatpush.msra.mxu0 %v2586_v27  ;;  %1029 = vmatpush.msra.mxu1 %v2589_v28 }
 0x2d6   : > { %1049 = vmatpush.msra.mxu2 %v2592_v29  ;;  %1069 = vmatpush.msra.mxu3 %v2595_v30 }
 0x2d7   : > { %1010 = vmatpush.msra.mxu0 %v2598_v31  ;;  %1030 = vmatpush.msra.mxu1 %v2601_v32 }
 0x2d8   : > { %1050 = vmatpush.msra.mxu2 %v2604_v33  ;;  %1070 = vmatpush.msra.mxu3 %v2607_v34 }
 0x2d9   : > { %1011 = vmatpush.msra.mxu0 %v2610_v35  ;;  %1031 = vmatpush.msra.mxu1 %v2613_v36 }
 0x2da   : > { %1051 = vmatpush.msra.mxu2 %v2616_v37  ;;  %1071 = vmatpush.msra.mxu3 %v2619_v38  ;;  %v1408_v38 = vld [vmem:[%s1913_s20 + $0x90] sm:$0xff]  ;;  %v1409_v37 = vld [vmem:[%s1913_s20 + $0x98] sm:$0xff] }
 0x2db   : > { %1012 = vmatpush.msra.mxu0 %v2622_v39  ;;  %1032 = vmatpush.msra.mxu1 %v2625_v40 }
 0x2dc   : > { %1052 = vmatpush.msra.mxu2 %v2628_v41  ;;  %1072 = vmatpush.msra.mxu3 %v2631_v42 }
 0x2dd   : > { %1013 = vmatpush.msra.mxu0 %v2634_v51  ;;  %1033 = vmatpush.msra.mxu1 %v2637_v46  ;;  %v2655_v46 = vld [vmem:[#allocation5 + $0x18] sm:$0xff] }
 0x2de   : > { %1053 = vmatpush.msra.mxu2 %v2640_v54  ;;  %1073 = vmatpush.msra.mxu3 %v2643_v44  ;;  %3045 = vst [vmem:[#allocation31_spill] sm:$0xff] %v2655_v46  ;;  %v1406_v54 = vld [vmem:[%s1913_s20 + $0x80] sm:$0xff]  ;;  %v1407_v44 = vld [vmem:[%s1913_s20 + $0x88] sm:$0xff] }
 0x2df   : > { %1014 = vmatpush.msra.mxu0 %v2646_v62  ;;  %1034 = vmatpush.msra.mxu1 %v2649_v53 }
 0x2e0   : > { %1054 = vmatpush.msra.mxu2 %v2652_v50  ;;  %1074 = vmatpush.msra.mxu3 %v2655_v46 }
 0x33c   : > { %v802_v51 = vpop.f32.mrf.mxu0  ;;  %v822_v42 = vpop.f32.mrf.mxu1 }
 0x33d   : > { %v865_v41 = vadd.f32 %v1406_v54, %v802_v51  ;;  %v866_v62 = vadd.f32 %v1407_v44, %v822_v42 }
 0x33f   : > { %v869_v40 = vmul.f32 0.5, %v865_v41  ;;  %v873_v39 = vmul.f32 0.5, %v866_v62  ;;  %v1414_v62 = vld [vmem:[%s1913_s20 + $0xc0] sm:$0xff] }
 0x341   : > { %1531 = vtanh.f32 %v869_v40 }
 0x342   : > { %1533 = vtanh.f32 %v873_v39 }
 0x343   : > { %v842_v53 = vpop.f32.mrf.mxu2  ;;  %v862_v36 = vpop.f32.mrf.mxu3 }
 0x344   : > { %v867_v35 = vadd.f32 %v1408_v38, %v842_v53  ;;  %v868_v50 = vadd.f32 %v1409_v37, %v862_v36  ;;  %v1415_v53 = vld [vmem:[%s1913_s20 + $0xc8] sm:$0xff] }
 0x346   : > { %1535 = vtanh.f32 %v867_v35  ;;  %v878_v34 = vmul.f32 0.5, %v868_v50  ;;  %v1223_v50 = vld [vmem:[%s2861_s2 + $0x78] sm:$0xff] }
 0x347   : > { %v1532_v33 = vpop.eup %1531 }
 0x348   : > { %v1534_v46 = vpop.eup %1533  ;;  %v871_v32 = vmul.f32 0.5, %v1532_v33  ;;  %1537 = vtanh.f32 %v878_v34 }
 0x349   : > { %v875_v31 = vmul.f32 0.5, %v1534_v46 }
 0x34a   : > { %v872_v30 = vadd.f32 0.5, %v871_v32 }
 0x34b   : > { %v876_v51 = vadd.f32 0.5, %v875_v31 }
 0x34c   : > { %v1536_v42 = vpop.eup %1535 }
 0x34d   : > { %v882_v41 = vmul.f32 %v876_v51, %v2463_v43  ;;  %v883_v40 = vmul.f32 %v1536_v42, %v872_v30  ;;  %v3046_v43 = vld [vmem:[#allocation14_spill] sm:$0xff] }
 0x34e   : > { %v1538_v54 = vpop.eup %1537 }
 0x34f   : > { %v2663_v44 = vadd.f32 %v883_v40, %v882_v41  ;;  %v880_v38 = vmul.f32 0.5, %v1538_v54 }
 0x351   : > { %1539 = vtanh.f32 %v2663_v44  ;;  %v881_v36 = vadd.f32 0.5, %v880_v38  ;;  %v1416_v38 = vld [vmem:[%s1913_s20 + $0xd0] sm:$0xff] }
 0x357   : > { %v1540_v35 = vpop.eup %1539 }
 0x358   : > { %v886_v37 = vmul.f32 %v1540_v35, %v881_v36  ;;  %v1417_v36 = vld [vmem:[%s1913_s20 + $0xd8] sm:$0xff] }
 0x35a   : > { %908 = vmatmul.f32.vlgmr.msrb.gmra.mxu0 %v886_v37  ;;  %928 = vmatmul.f32.vlgmr.msrb.gmra.mxu1 %v886_v37 }
 0x35b   : > { %948 = vmatmul.f32.vlgmr.msrb.gmra.mxu2 %v886_v37  ;;  %968 = vmatmul.f32.vlgmr.msrb.gmra.mxu3 %v886_v37 }
 0x35c   : > { %1106 = vmatpush.msrb.mxu0 %v2466_v48  ;;  %1126 = vmatpush.msrb.mxu1 %v2469_v47  ;;  %v3047_v48 = vld [vmem:[#allocation11_spill] sm:$0xff]  ;;  %v3048_v47 = vld [vmem:[#allocation12_spill] sm:$0xff] }
 0x35d   : > { %1146 = vmatpush.msrb.mxu2 %v2472_v56  ;;  %1166 = vmatpush.msrb.mxu3 %v2475_v59  ;;  %v3049_v56 = vld [vmem:[#allocation13_spill] sm:$0xff]  ;;  %v3050_v59 = vld [vmem:[#allocation18_spill] sm:$0xff] }
 0x35e   : > { %1107 = vmatpush.msrb.mxu0 %v2478_v61  ;;  %1127 = vmatpush.msrb.mxu1 %v2481_v58  ;;  %v3051_v61 = vld [vmem:[#allocation15_spill] sm:$0xff]  ;;  %v3052_v58 = vld [vmem:[#allocation16_spill] sm:$0xff] }
 0x35f   : > { %1147 = vmatpush.msrb.mxu2 %v2484_v57  ;;  %1167 = vmatpush.msrb.mxu3 %v2487_v52  ;;  %v3053_v57 = vld [vmem:[#allocation17_spill] sm:$0xff]  ;;  %v3054_v52 = vld [vmem:[#allocation22_spill] sm:$0xff] }
 0x360   : > { %1108 = vmatpush.msrb.mxu0 %v2490_v60  ;;  %1128 = vmatpush.msrb.mxu1 %v2493_v49  ;;  %v3055_v60 = vld [vmem:[#allocation19_spill] sm:$0xff]  ;;  %v3056_v49 = vld [vmem:[#allocation20_spill] sm:$0xff] }
 0x361   : > { %1148 = vmatpush.msrb.mxu2 %v2496_v63  ;;  %1168 = vmatpush.msrb.mxu3 %v2499_v45  ;;  %v3057_v63 = vld [vmem:[#allocation21_spill] sm:$0xff]  ;;  %v3058_v45 = vld [vmem:[#allocation26_spill] sm:$0xff] }
 0x362   : > { %1109 = vmatpush.msrb.mxu0 %v2502_v55  ;;  %1129 = vmatpush.msrb.mxu1 %v2505_v0  ;;  %v3059_v55 = vld [vmem:[#allocation23_spill] sm:$0xff]  ;;  %v3060_v0 = vld [vmem:[#allocation24_spill] sm:$0xff] }
 0x363   : > { %1149 = vmatpush.msrb.mxu2 %v2508_v1  ;;  %1169 = vmatpush.msrb.mxu3 %v2511_v2  ;;  %v3061_v1 = vld [vmem:[#allocation25_spill] sm:$0xff]  ;;  %v3062_v2 = vld [vmem:[#allocation30_spill] sm:$0xff] }
 0x364   : > { %1110 = vmatpush.msrb.mxu0 %v2514_v3  ;;  %1130 = vmatpush.msrb.mxu1 %v2517_v4  ;;  %v3063_v3 = vld [vmem:[#allocation27_spill] sm:$0xff]  ;;  %v3064_v4 = vld [vmem:[#allocation28_spill] sm:$0xff] }
 0x365   : > { %1150 = vmatpush.msrb.mxu2 %v2520_v5  ;;  %1170 = vmatpush.msrb.mxu3 %v2523_v6  ;;  %v3065_v5 = vld [vmem:[#allocation29_spill] sm:$0xff]  ;;  %v3066_v6 = vld [vmem:[#allocation31_spill] sm:$0xff] }
 0x366   : > { %1111 = vmatpush.msrb.mxu0 %v2526_v7  ;;  %1131 = vmatpush.msrb.mxu1 %v2529_v8  ;;  %v1410_v7 = vld [vmem:[%s1913_s20 + $0xa0] sm:$0xff]  ;;  %v1411_v8 = vld [vmem:[%s1913_s20 + $0xa8] sm:$0xff] }
 0x367   : > { %1151 = vmatpush.msrb.mxu2 %v2532_v9  ;;  %1171 = vmatpush.msrb.mxu3 %v2535_v10 }
 0x368   : > { %1112 = vmatpush.msrb.mxu0 %v2538_v11  ;;  %1132 = vmatpush.msrb.mxu1 %v2541_v12 }
 0x369   : > { %1152 = vmatpush.msrb.mxu2 %v2544_v13  ;;  %1172 = vmatpush.msrb.mxu3 %v2547_v14 }
 0x36a   : > { %1113 = vmatpush.msrb.mxu0 %v2550_v15  ;;  %1133 = vmatpush.msrb.mxu1 %v2553_v16  ;;  %v1412_v15 = vld [vmem:[%s1913_s20 + $0xb0] sm:$0xff]  ;;  %v1413_v16 = vld [vmem:[%s1913_s20 + $0xb8] sm:$0xff] }
 0x36b   : > { %1153 = vmatpush.msrb.mxu2 %v2556_v17  ;;  %1173 = vmatpush.msrb.mxu3 %v2559_v18 }
 0x36c   : > { %1114 = vmatpush.msrb.mxu0 %v2562_v19  ;;  %1134 = vmatpush.msrb.mxu1 %v2565_v20 }
 0x36d   : > { %1154 = vmatpush.msrb.mxu2 %v2568_v21  ;;  %1174 = vmatpush.msrb.mxu3 %v2571_v22 }
 0x36e   : > { %1115 = vmatpush.msrb.mxu0 %v2574_v23  ;;  %1135 = vmatpush.msrb.mxu1 %v2577_v24 }
 0x36f   : > { %1155 = vmatpush.msrb.mxu2 %v2580_v25  ;;  %1175 = vmatpush.msrb.mxu3 %v2583_v26 }
 0x370   : > { %1116 = vmatpush.msrb.mxu0 %v2586_v27  ;;  %1136 = vmatpush.msrb.mxu1 %v2589_v28 }
 0x371   : > { %1156 = vmatpush.msrb.mxu2 %v2592_v29  ;;  %1176 = vmatpush.msrb.mxu3 %v3046_v43 }
 0x372   : > { %1117 = vmatpush.msrb.mxu0 %v3047_v48  ;;  %1137 = vmatpush.msrb.mxu1 %v3048_v47 }
 0x373   : > { %1157 = vmatpush.msrb.mxu2 %v3049_v56  ;;  %1177 = vmatpush.msrb.mxu3 %v3050_v59 }
 0x374   : > { %1118 = vmatpush.msrb.mxu0 %v3051_v61  ;;  %1138 = vmatpush.msrb.mxu1 %v3052_v58 }
 0x375   : > { %1158 = vmatpush.msrb.mxu2 %v3053_v57  ;;  %1178 = vmatpush.msrb.mxu3 %v3054_v52 }
 0x376   : > { %1119 = vmatpush.msrb.mxu0 %v3055_v60  ;;  %1139 = vmatpush.msrb.mxu1 %v3056_v49 }
 0x377   : > { %1159 = vmatpush.msrb.mxu2 %v3057_v63  ;;  %1179 = vmatpush.msrb.mxu3 %v3058_v45 }
 0x378   : > { %1120 = vmatpush.msrb.mxu0 %v3059_v55  ;;  %1140 = vmatpush.msrb.mxu1 %v3060_v0 }
 0x379   : > { %1160 = vmatpush.msrb.mxu2 %v3061_v1  ;;  %1180 = vmatpush.msrb.mxu3 %v3062_v2 }
 0x37a   : > { %1121 = vmatpush.msrb.mxu0 %v3063_v3  ;;  %1141 = vmatpush.msrb.mxu1 %v3064_v4  ;;  %v1222_v4 = vld [vmem:[%s2861_s2 + $0x70] sm:$0xff] }
 0x37b   : > { %1161 = vmatpush.msrb.mxu2 %v3065_v5  ;;  %1181 = vmatpush.msrb.mxu3 %v3066_v6  ;;  %v1221_v5 = vld [vmem:[%s2861_s2 + $0x68] sm:$0xff]  ;;  %v1220_v6 = vld [vmem:[%s2861_s2 + $0x60] sm:$0xff] }
 0x3d7   : > { %v909_v9 = vpop.f32.mrf.mxu0  ;;  %v929_v10 = vpop.f32.mrf.mxu1 }
 0x3d8   : > { %v972_v11 = vadd.f32 %v1410_v7, %v909_v9  ;;  %v973_v12 = vadd.f32 %v1411_v8, %v929_v10  ;;  %v1219_v7 = vld [vmem:[%s2861_s2 + $0x58] sm:$0xff]  ;;  %v1218_v8 = vld [vmem:[%s2861_s2 + $0x50] sm:$0xff]  ;;  %v1217_v9 = vld [vmem:[%s2861_s2 + $0x48] sm:$0xff] }
 0x3d9   : > { %v1216_v10 = vld [vmem:[%s2861_s2 + $0x40] sm:$0xff] }
 0x3da   : > { %v976_v13 = vmul.f32 0.5, %v972_v11  ;;  %v980_v14 = vmul.f32 0.5, %v973_v12  ;;  %v1215_v11 = vld [vmem:[%s2861_s2 + $0x38] sm:$0xff]  ;;  %v1214_v12 = vld [vmem:[%s2861_s2 + $0x30] sm:$0xff] }
 0x3dc   : > { %1541 = vtanh.f32 %v976_v13  ;;  %v1213_v13 = vld [vmem:[%s2861_s2 + $0x28] sm:$0xff] }
 0x3dd   : > { %1543 = vtanh.f32 %v980_v14  ;;  %v1212_v14 = vld [vmem:[%s2861_s2 + $0x20] sm:$0xff] }
 0x3de   : > { %v949_v17 = vpop.f32.mrf.mxu2  ;;  %v969_v18 = vpop.f32.mrf.mxu3 }
 0x3df   : > { %v974_v19 = vadd.f32 %v1412_v15, %v949_v17  ;;  %v975_v20 = vadd.f32 %v1413_v16, %v969_v18  ;;  %v1211_v15 = vld [vmem:[%s2861_s2 + $0x18] sm:$0xff]  ;;  %v1210_v16 = vld [vmem:[%s2861_s2 + $0x10] sm:$0xff]  ;;  %v1209_v17 = vld [vmem:[%s2861_s2 + $0x8] sm:$0xff] }
 0x3e0   : > { %v1208_v18 = vld [vmem:[%s2861_s2] sm:$0xff] }
 0x3e1   : > { %1545 = vtanh.f32 %v974_v19  ;;  %v985_v21 = vmul.f32 0.5, %v975_v20  ;;  %v1418_v19 = vld [vmem:[%s1913_s20 + $0xe0] sm:$0xff]  ;;  %v1419_v20 = vld [vmem:[%s1913_s20 + $0xe8] sm:$0xff] }
 0x3e2   : > { %v1542_v22 = vpop.eup %1541 }
 0x3e3   : > { %v1544_v23 = vpop.eup %1543  ;;  %v978_v24 = vmul.f32 0.5, %v1542_v22  ;;  %1547 = vtanh.f32 %v985_v21  ;;  %v1256_v21 = vld [vmem:[%s2863_s4 + $0x38] sm:$0xff]  ;;  %v1255_v22 = vld [vmem:[%s2863_s4 + $0x30] sm:$0xff] }
 0x3e4   : > { %v982_v25 = vmul.f32 0.5, %v1544_v23 }
 0x3e5   : > { %v979_v26 = vadd.f32 0.5, %v978_v24 }
 0x3e6   : > { %v983_v27 = vadd.f32 0.5, %v982_v25  ;;  %v1254_v25 = vld [vmem:[%s2863_s4 + $0x28] sm:$0xff] }
 0x3e7   : > { %v1546_v28 = vpop.eup %1545 }
 0x3e8   : > { %v989_v29 = vmul.f32 %v983_v27, %v2663_v44  ;;  %v990_v30 = vmul.f32 %v1546_v28, %v979_v26 }
 0x3e9   : > { %v1548_v31 = vpop.eup %1547 }
 0x3ea   : > { %v991_v32 = vadd.f32 %v990_v30, %v989_v29  ;;  %v987_v33 = vmul.f32 0.5, %v1548_v31  ;;  %v1420_v30 = vld [vmem:[%s1913_s20 + $0xf0] sm:$0xff]  ;;  %v1421_v31 = vld [vmem:[%s1913_s20 + $0xf8] sm:$0xff] }
 0x3ec   : > { %1549 = vtanh.f32 %v991_v32  ;;  %v988_v34 = vadd.f32 0.5, %v987_v33 }
 0x3f2   : > { %v1550_v39 = vpop.eup %1549 }
 0x3f3   : > { %v993_v46 = vmul.f32 %v1550_v39, %v988_v34 }
 0x3f5   : > { %1015 = vmatmul.f32.vlgmr.msra.gmra.mxu0 %v993_v46  ;;  %1035 = vmatmul.f32.vlgmr.msra.gmra.mxu1 %v993_v46 }
 0x3f6   : > { %1055 = vmatmul.f32.vlgmr.msra.gmra.mxu2 %v993_v46  ;;  %1075 = vmatmul.f32.vlgmr.msra.gmra.mxu3 %v993_v46 }
 0x3f7   : > { %1228 = vmatpush.msra.mxu0 %v1223_v50  ;;  %1273 = vmatpush.msra.mxu1 %v1256_v21 }
 0x3f9   : > { %1229 = vmatpush.msra.mxu0 %v1222_v4  ;;  %1274 = vmatpush.msra.mxu1 %v1255_v22 }
 0x3fb   : > { %1230 = vmatpush.msra.mxu0 %v1221_v5  ;;  %1275 = vmatpush.msra.mxu1 %v1254_v25 }
 0x3fd   : > { %1231 = vmatpush.msra.mxu0 %v1220_v6 }
 0x3ff   : > { %1232 = vmatpush.msra.mxu0 %v1219_v7 }
 0x401   : > { %1233 = vmatpush.msra.mxu0 %v1218_v8 }
 0x403   : > { %1234 = vmatpush.msra.mxu0 %v1217_v9 }
 0x405   : > { %1235 = vmatpush.msra.mxu0 %v1216_v10 }
 0x407   : > { %1236 = vmatpush.msra.mxu0 %v1215_v11 }
 0x409   : > { %1237 = vmatpush.msra.mxu0 %v1214_v12 }
 0x40b   : > { %1238 = vmatpush.msra.mxu0 %v1213_v13 }
 0x40d   : > { %1239 = vmatpush.msra.mxu0 %v1212_v14 }
 0x40f   : > { %1240 = vmatpush.msra.mxu0 %v1211_v15 }
 0x411   : > { %1241 = vmatpush.msra.mxu0 %v1210_v16 }
 0x413   : > { %1242 = vmatpush.msra.mxu0 %v1209_v17 }
 0x415   : > { %1243 = vmatpush.msra.mxu0 %v1208_v18 }
 0x472   : > { %v1016_v51 = vpop.f32.mrf.mxu0  ;;  %v1036_v42 = vpop.f32.mrf.mxu1 }
 0x473   : > { %v1079_v41 = vadd.f32 %v1414_v62, %v1016_v51  ;;  %v1080_v40 = vadd.f32 %v1415_v53, %v1036_v42 }
 0x475   : > { %v1083_v54 = vmul.f32 0.5, %v1079_v41  ;;  %v1087_v44 = vmul.f32 0.5, %v1080_v40 }
 0x477   : > { %1551 = vtanh.f32 %v1083_v54 }
 0x478   : > { %1553 = vtanh.f32 %v1087_v44 }
 0x479   : > { %v1056_v35 = vpop.f32.mrf.mxu2  ;;  %v1076_v37 = vpop.f32.mrf.mxu3 }
 0x47a   : > { %v1081_v43 = vadd.f32 %v1416_v38, %v1056_v35  ;;  %v1082_v48 = vadd.f32 %v1417_v36, %v1076_v37 }
 0x47c   : > { %1555 = vtanh.f32 %v1081_v43  ;;  %v1092_v47 = vmul.f32 0.5, %v1082_v48 }
 0x47d   : > { %v1552_v56 = vpop.eup %1551 }
 0x47e   : > { %v1554_v59 = vpop.eup %1553  ;;  %v1085_v61 = vmul.f32 0.5, %v1552_v56  ;;  %1557 = vtanh.f32 %v1092_v47  ;;  %v1253_v47 = vld [vmem:[%s2863_s4 + $0x20] sm:$0xff]  ;;  %v1252_v56 = vld [vmem:[%s2863_s4 + $0x18] sm:$0xff] }
 0x47f   : > { %v1089_v58 = vmul.f32 0.5, %v1554_v59  ;;  %1276 = vmatpush.msra.mxu1 %v1253_v47  ;;  %v1251_v59 = vld [vmem:[%s2863_s4 + $0x10] sm:$0xff] }
 0x480   : > { %v1086_v57 = vadd.f32 0.5, %v1085_v61  ;;  %v1250_v61 = vld [vmem:[%s2863_s4 + $0x8] sm:$0xff] }
 0x481   : > { %v1090_v52 = vadd.f32 0.5, %v1089_v58  ;;  %1277 = vmatpush.msra.mxu1 %v1252_v56  ;;  %v1249_v58 = vld [vmem:[%s2863_s4] sm:$0xff] }
 0x482   : > { %v1556_v60 = vpop.eup %1555 }
 0x483   : > { %v1096_v49 = vmul.f32 %v1090_v52, %v991_v32  ;;  %v1097_v63 = vmul.f32 %v1556_v60, %v1086_v57  ;;  %1278 = vmatpush.msra.mxu1 %v1251_v59  ;;  %v1489_v57 = vld [vmem:[%s2862_s3] ss:$0 sm:$0xff] }
 0x484   : > { %v1558_v45 = vpop.eup %1557 }
 0x485   : > { %v2742_v55 = vadd.f32 %v1097_v63, %v1096_v49  ;;  %v1094_v0 = vmul.f32 0.5, %v1558_v45  ;;  %1279 = vmatpush.msra.mxu1 %v1250_v61  ;;  %v1490_v63 = vld [vmem:[%s2864_s5] ss:$0 sm:$0xff] }
 0x487   : > { %1559 = vtanh.f32 %v2742_v55  ;;  %v1095_v1 = vadd.f32 0.5, %v1094_v0  ;;  %1280 = vmatpush.msra.mxu1 %v1249_v58 }
 0x48d   : > { %v1560_v2 = vpop.eup %1559 }
 0x48e   : > { %v1100_v3 = vmul.f32 %v1560_v2, %v1095_v1 }
 0x490   : > { %1122 = vmatmul.f32.vlgmr.msrb.gmra.mxu0 %v1100_v3  ;;  %1142 = vmatmul.f32.vlgmr.msrb.gmra.mxu1 %v1100_v3 }
 0x491   : > { %1162 = vmatmul.f32.vlgmr.msrb.gmra.mxu2 %v1100_v3  ;;  %1182 = vmatmul.f32.vlgmr.msrb.gmra.mxu3 %v1100_v3 }
 0x50d   : > { %v1123_v23 = vpop.f32.mrf.mxu0  ;;  %v1143_v24 = vpop.f32.mrf.mxu1 }
 0x50e   : > { %v1186_v26 = vadd.f32 %v1418_v19, %v1123_v23  ;;  %v1187_v27 = vadd.f32 %v1419_v20, %v1143_v24 }
 0x510   : > { %v1190_v28 = vmul.f32 0.5, %v1186_v26  ;;  %v1194_v29 = vmul.f32 0.5, %v1187_v27 }
 0x512   : > { %1561 = vtanh.f32 %v1190_v28 }
 0x513   : > { %1563 = vtanh.f32 %v1194_v29 }
 0x514   : > { %v1163_v32 = vpop.f32.mrf.mxu2  ;;  %v1183_v33 = vpop.f32.mrf.mxu3 }
 0x515   : > { %v1188_v34 = vadd.f32 %v1420_v30, %v1163_v32  ;;  %v1189_v39 = vadd.f32 %v1421_v31, %v1183_v33 }
 0x517   : > { %1565 = vtanh.f32 %v1188_v34  ;;  %v1199_v46 = vmul.f32 0.5, %v1189_v39 }
 0x518   : > { %v1562_v62 = vpop.eup %1561 }
 0x519   : > { %v1564_v53 = vpop.eup %1563  ;;  %v1192_v50 = vmul.f32 0.5, %v1562_v62  ;;  %1567 = vtanh.f32 %v1199_v46 }
 0x51a   : > { %v1196_v51 = vmul.f32 0.5, %v1564_v53 }
 0x51b   : > { %v1193_v42 = vadd.f32 0.5, %v1192_v50 }
 0x51c   : > { %v1197_v41 = vadd.f32 0.5, %v1196_v51 }
 0x51d   : > { %v1566_v40 = vpop.eup %1565 }
 0x51e   : > { %v1203_v54 = vmul.f32 %v1197_v41, %v2742_v55  ;;  %v1204_v44 = vmul.f32 %v1566_v40, %v1193_v42 }
 0x51f   : > { %v1568_v38 = vpop.eup %1567 }
 0x520   : > { %v1205_v36 = vadd.f32 %v1204_v44, %v1203_v54  ;;  %v1201_v35 = vmul.f32 0.5, %v1568_v38 }
 0x522   : > { %1569 = vtanh.f32 %v1205_v36  ;;  %v1202_v37 = vadd.f32 0.5, %v1201_v35 }
 0x528   : > { %v1570_v43 = vpop.eup %1569 }
 0x529   : > { %v1207_v48 = vmul.f32 %v1570_v43, %v1202_v37 }
 0x52b   : > { %1244 = vmatmul.f32.vlgmr.msra.gmra.mxu0 %v1207_v48 }
 0x5a8   : > { %v1245_v52 = vpop.f32.mrf.mxu0 }
 0x5a9   : > { %v1246_v60 = vadd.f32 %v1489_v57, %v1245_v52 }
 0x5ab   : > { %1571 = vtanh.f32 %v1246_v60 }
 0x5b1   : > { %v1572_v49 = vpop.eup %1571 }
 0x5b2   : > { %1422 = vmatmul.msk.f32.vlgmr.msra.gmra.mxu1 %vm1261_vm0, %v1572_v49 }
 0x62f   : > { %v1282_v45 = vpop.f32.mrf.mxu1 }
 0x630   : > { %v1283_v55 = vadd.f32 %v1490_v63, %v1282_v45 }
 0x632   : > { %1286 = vst.msk [vmem:[%s288_s13] sm:$0xff] %vm1285_vm1, %v1283_v55 }
 0x633   : > { %1724 = shalt.err (!%p1721_p10)
}
 0x634   : > { %1434 = dma.vmem_to_hbm [thread:$0]  (%p1879_p7), %s1301_s1, 128, %s1303_s27, %s1288_s8  }
 0x635 PF: > { %s1314_s19 = sand.u32 1, %s1755_s21   ;;  %p3067_p12 = scmp.ge.s32.totalorder %s1767_s24, 2 }
 0x636   : > { %s1315_s30 = scalar_lea.sflag [#allocation4], %s1314_s19 }
 0x637   : > { %p1445_p13 = pnand %p3067_p12, %p1844_p6 }
 0x639   : > { %p1446_p0 = pneg %p1445_p13 }
 0x63b   : > { %1750 = dma.done.wait (%p1446_p0), %s1315_s30, 128  }
 0x63c   : > { %1752 = vsyncadd (%p1446_p0), %s1315_s30, 4294967168  ;;  %p20_p3 = scmp.ge.s32.totalorder %s1862_s11, 4   ;;  %s3068_s21 = smov %s1759_s22 }
 0x63d   : > { %s3069_s22 = smov %s1763_s23  ;;  %s3070_s23 = smov %s1875_s16 }
 0x63e   : > { %s3071_s24 = smov %s1862_s11  ;;  %22 = sbr.rel (!%p20_p3) target bundleno = 8 (0x8), region = 100 }
 0x643   :  { %1321 = vsyncpa [#allocation3], 1 }
 0x644   :  { %1323 = vsyncpa [#allocation3 + $0x1], 1 }
 0x645   :  { %1324 = vsyncpa [#allocation6], 1 }
 0x646   :  { %1325 = vsyncpa [#allocation4], 1 }
 0x647   :  { %1327 = vsyncpa [#allocation4 + $0x1], 1 }

</bundles_post_ra>
